<compile_context>
chip_gen: v7x
topology: tpu7x:2x2x1
jax: 0.10.0
libtpu: 0.0.40
codegen_flags: <defaults>
</compile_context>

<pallas_src>
import jax
import jax.numpy as jnp
from jax.experimental import pallas as pl
from jax.experimental.pallas import tpu as pltpu


def _round_up(x, m):
    return ((x + m - 1) // m) * m


# ----------------------------------------------------------------------------
# Fused multi-step decoder kernel: (folded) embedding gather + LSTM cell + FC.
# Grid axis 0 = decode step.  Weights resident in VMEM across all steps.
# ----------------------------------------------------------------------------
def _decoder_kernel(tok_ref,                       # SMEM (T, B) int32  [scalar prefetch]
                    h0_ref, c0_ref,                # VMEM (B, H) f32
                    ew_ref,                        # VMEM (V_pad, 4H) f32   emb @ W_ih^T
                    whh_ref,                       # VMEM (H, 4H) bf16      W_hh^T
                    b_ref,                         # VMEM (1, 4H) f32       b_ih + b_hh
                    wfc_ref,                       # VMEM (H, V_pad) bf16   W_fc^T
                    bfc_ref,                       # VMEM (1, V_pad) f32
                    pred_ref,                      # VMEM (1, B, V_pad) f32 out
                    h_out_ref, c_out_ref,          # VMEM (B, H) f32 out
                    h_sc, c_sc, xg_sc):            # VMEM scratch
    t = pl.program_id(0)
    B, H = h_sc.shape

    @pl.when(t == 0)
    def _():
        h_sc[...] = h0_ref[...]
        c_sc[...] = c0_ref[...]

    # --- Embedding (pre-folded into W_ih): gather EW[token] rows -------------
    # Tokens are SMEM scalars; each row is a lane-dense (1, 4H) f32 slab.
    for row in range(B):
        tok = tok_ref[t, row]
        xg_sc[pl.ds(row, 1), :] = ew_ref[pl.ds(tok, 1), :]

    # --- LSTM cell ------------------------------------------------------------
    h = h_sc[...]
    c = c_sc[...]
    gates = (xg_sc[...]
             + jnp.dot(h.astype(jnp.bfloat16), whh_ref[...],
                       preferred_element_type=jnp.float32)
             + b_ref[...])                                   # (B, 4H) f32

    # torch.nn.LSTM gate order (i, f, g, o); H multiple of 128 -> lane-aligned.
    i = jax.nn.sigmoid(gates[:, 0 * H:1 * H])
    f = jax.nn.sigmoid(gates[:, 1 * H:2 * H])
    g = jnp.tanh(gates[:, 2 * H:3 * H])
    o = jax.nn.sigmoid(gates[:, 3 * H:4 * H])

    c_new = f * c + i * g
    h_new = o * jnp.tanh(c_new)
    h_sc[...] = h_new
    c_sc[...] = c_new

    # --- FC head (lane-dense padded vocab) ------------------------------------
    pred = jnp.dot(h_new.astype(jnp.bfloat16), wfc_ref[...],
                   preferred_element_type=jnp.float32) + bfc_ref[...]
    pred_ref[0] = pred

    h_out_ref[...] = h_new
    c_out_ref[...] = c_new


# ----------------------------------------------------------------------------
# Multi-step wrapper: tokens (T, B) teacher-forced; weights loaded once.
# ----------------------------------------------------------------------------
def decoder_decode(params, tokens, hidden, cell):
    """tokens: (T, B) int32; hidden, cell: (1, B, H) f32.
    Returns (predictions (T, B, V), hidden (1, B, H), cell (1, B, H))."""
    T, B = tokens.shape
    H = params["hidden_size"]
    V = params["output_size"]
    V_pad = params["vocab_pad"]
    B_pad = _round_up(max(B, 8), 8)          # full sublanes -> unmasked stores

    h0 = jnp.pad(hidden.reshape(B, H), ((0, B_pad - B), (0, 0)))
    c0 = jnp.pad(cell.reshape(B, H), ((0, B_pad - B), (0, 0)))
    tok = jnp.pad(tokens.astype(jnp.int32), ((0, 0), (0, B_pad - B)))

    grid_spec = pltpu.PrefetchScalarGridSpec(
        num_scalar_prefetch=1,
        grid=(T,),
        in_specs=[
            pl.BlockSpec((B_pad, H), lambda t, tok: (0, 0)),       # h0
            pl.BlockSpec((B_pad, H), lambda t, tok: (0, 0)),       # c0
            pl.BlockSpec((V_pad, 4 * H), lambda t, tok: (0, 0)),   # EW (resident)
            pl.BlockSpec((H, 4 * H), lambda t, tok: (0, 0)),       # W_hh^T (resident)
            pl.BlockSpec((1, 4 * H), lambda t, tok: (0, 0)),       # bias
            pl.BlockSpec((H, V_pad), lambda t, tok: (0, 0)),       # W_fc^T (resident)
            pl.BlockSpec((1, V_pad), lambda t, tok: (0, 0)),       # fc bias
        ],
        out_specs=[
            pl.BlockSpec((1, B_pad, V_pad), lambda t, tok: (t, 0, 0)),  # logits per step
            pl.BlockSpec((B_pad, H), lambda t, tok: (0, 0)),            # final h
            pl.BlockSpec((B_pad, H), lambda t, tok: (0, 0)),            # final c
        ],
        scratch_shapes=[
            pltpu.VMEM((B_pad, H), jnp.float32),       # h carry
            pltpu.VMEM((B_pad, H), jnp.float32),       # c carry
            pltpu.VMEM((B_pad, 4 * H), jnp.float32),   # gathered gate contributions
        ],
    )

    pred, h_new, c_new = pl.pallas_call(
        _decoder_kernel,
        grid_spec=grid_spec,
        out_shape=(
            jax.ShapeDtypeStruct((T, B_pad, V_pad), jnp.float32),
            jax.ShapeDtypeStruct((B_pad, H), jnp.float32),
            jax.ShapeDtypeStruct((B_pad, H), jnp.float32),
        ),
        compiler_params=pltpu.CompilerParams(
            dimension_semantics=("arbitrary",),        # recurrent carry over time
            vmem_limit_bytes=32 * 1024 * 1024,
        ),
    )(tok, h0, c0, params["ew"], params["whh"], params["b"],
      params["wfc"], params["bfc"])

    return (pred[:, :B, :V],
            h_new[:B].reshape(1, B, H),
            c_new[:B].reshape(1, B, H))


# ----------------------------------------------------------------------------
# Single-step wrapper == torch Decoder.forward(input, hidden, cell).
# ----------------------------------------------------------------------------
def decoder_forward(params, tokens, hidden, cell):
    pred, h_new, c_new = decoder_decode(params, tokens[None, :], hidden, cell)
    return pred[0], h_new, c_new


# ----------------------------------------------------------------------------
# Parameter init: raw f32 params (torch-style) + packed kernel params with the
# embedding folded into W_ih and vocab padded to 128 lanes.
# ----------------------------------------------------------------------------
def init_decoder_params(key, hidden_size, output_size):
    assert hidden_size % 128 == 0, "hidden_size must be a multiple of 128"
    H, V = hidden_size, output_size
    V_pad = _round_up(V, 128)
    k = 1.0 / jnp.sqrt(jnp.float32(H))
    keys = jax.random.split(key, 7)

    def unif(kk, shape):
        return jax.random.uniform(kk, shape, jnp.float32, -k, k)

    emb = jax.random.normal(keys[0], (V, H), jnp.float32)   # nn.Embedding ~ N(0,1)
    w_ih = unif(keys[1], (4 * H, H))
    w_hh = unif(keys[2], (4 * H, H))
    b_ih = unif(keys[3], (4 * H,))
    b_hh = unif(keys[4], (4 * H,))
    w_fc = unif(keys[5], (V, H))
    b_fc = unif(keys[6], (V,))

    raw = dict(emb=emb, w_ih=w_ih, w_hh=w_hh, b_ih=b_ih, b_hh=b_hh,
               w_fc=w_fc, b_fc=b_fc, hidden_size=H, output_size=V)

    # Fold the embedding into the input->gate projection: EW[v] = emb[v] @ W_ih^T.
    ew = jnp.pad(emb @ w_ih.T, ((0, V_pad - V), (0, 0)))                    # (V_pad, 4H) f32
    whh = w_hh.T.astype(jnp.bfloat16)                                       # (H, 4H) bf16
    b = (b_ih + b_hh).reshape(1, 4 * H)                                     # (1, 4H) f32
    wfc = jnp.pad(w_fc.T, ((0, 0), (0, V_pad - V))).astype(jnp.bfloat16)    # (H, V_pad) bf16
    bfc = jnp.pad(b_fc.reshape(1, V), ((0, 0), (0, V_pad - V)))             # (1, V_pad) f32

    params = dict(ew=ew, whh=whh, b=b, wfc=wfc, bfc=bfc,
                  hidden_size=H, output_size=V, vocab_pad=V_pad)
    return params, raw


# ----------------------------------------------------------------------------
# Pure-JAX f32 reference (torch LSTM semantics) for correctness checks.
# ----------------------------------------------------------------------------
def decoder_reference(raw, tokens, hidden, cell):
    H = raw["hidden_size"]
    x = raw["emb"][tokens.astype(jnp.int32)]                 # (B, H)
    h = hidden.reshape(-1, H)
    c = cell.reshape(-1, H)
    gates = x @ raw["w_ih"].T + h @ raw["w_hh"].T + raw["b_ih"] + raw["b_hh"]
    i = jax.nn.sigmoid(gates[:, 0 * H:1 * H])
    f = jax.nn.sigmoid(gates[:, 1 * H:2 * H])
    g = jnp.tanh(gates[:, 2 * H:3 * H])
    o = jax.nn.sigmoid(gates[:, 3 * H:4 * H])
    c_new = f * c + i * g
    h_new = o * jnp.tanh(c_new)
    pred = h_new @ raw["w_fc"].T + raw["b_fc"]
    return pred, h_new[None], c_new[None]


if __name__ == "__main__":
    hidden_size = 256     # matches the module's global hidden_size
    output_size = 96      # vocab; padded to 128 lanes inside the kernel
    batch = 4             # padded to 8 sublanes internally
    T = 4                 # decode steps for the time-fused path

    root = jax.random.PRNGKey(0)
    k_params, k_tok, k_h, k_c = jax.random.split(root, 4)

    params, raw = init_decoder_params(k_params, hidden_size, output_size)
    tokens_seq = jax.random.randint(k_tok, (T, batch), 0, output_size, jnp.int32)
    hidden = 0.1 * jax.random.normal(k_h, (1, batch, hidden_size), jnp.float32)
    cell = 0.1 * jax.random.normal(k_c, (1, batch, hidden_size), jnp.float32)

    # --- Single step: exactly the torch module's forward ----------------------
    pred, h1, c1 = decoder_forward(params, tokens_seq[0], hidden, cell)
    pred, h1, c1 = jax.block_until_ready((pred, h1, c1))
    assert pred.shape == (batch, output_size), pred.shape
    assert h1.shape == (1, batch, hidden_size), h1.shape
    assert c1.shape == (1, batch, hidden_size), c1.shape
    assert pred.dtype == jnp.float32
    assert bool(jnp.all(jnp.isfinite(pred)))

    pred_r, h_r, c_r = decoder_reference(raw, tokens_seq[0], hidden, cell)
    assert bool(jnp.allclose(pred, pred_r, rtol=5e-2, atol=5e-2))
    assert bool(jnp.allclose(h1, h_r, rtol=5e-2, atol=5e-2))
    assert bool(jnp.allclose(c1, c_r, rtol=5e-2, atol=5e-2))

    # --- Time-fused multi-step decode (weights resident across all T steps) ---
    preds, hT, cT = decoder_decode(params, tokens_seq, hidden, cell)
    preds, hT, cT = jax.block_until_ready((preds, hT, cT))
    assert preds.shape == (T, batch, output_size)

    h_ref, c_ref = hidden, cell
    for t in range(T):
        p_ref, h_ref, c_ref = decoder_reference(raw, tokens_seq[t], h_ref, c_ref)
        assert bool(jnp.allclose(preds[t], p_ref, rtol=5e-2, atol=5e-2)), f"step {t}"
    assert bool(jnp.allclose(hT, h_ref, rtol=5e-2, atol=5e-2))
    assert bool(jnp.allclose(cT, c_ref, rtol=5e-2, atol=5e-2))

    print("KERNEL_OK")
</pallas_src>

<mosaic_0001>
module attributes {stable_mosaic.version = 11 : i64} {
  func.func @_decoder_kernel(%arg0: i32, %arg1: memref<1x8xi32, #tpu.memory_space<smem>>, %arg2: memref<8x256xf32, #tpu.memory_space<vmem>>, %arg3: memref<8x256xf32, #tpu.memory_space<vmem>>, %arg4: memref<128x1024xf32, #tpu.memory_space<vmem>>, %arg5: memref<256x1024xbf16, #tpu.memory_space<vmem>>, %arg6: memref<1x1024xf32, #tpu.memory_space<vmem>>, %arg7: memref<256x128xbf16, #tpu.memory_space<vmem>>, %arg8: memref<1x128xf32, #tpu.memory_space<vmem>>, %arg9: memref<1x8x128xf32, #tpu.memory_space<vmem>>, %arg10: memref<8x256xf32, #tpu.memory_space<vmem>>, %arg11: memref<8x256xf32, #tpu.memory_space<vmem>>, %arg12: memref<8x256xf32, #tpu.memory_space<vmem>>, %arg13: memref<8x256xf32, #tpu.memory_space<vmem>>, %arg14: memref<8x1024xf32, #tpu.memory_space<vmem>>) attributes {dimension_semantics = [#tpu.dimension_semantics<arbitrary>], iteration_bounds = array<i64: 1>, scalar_prefetch = 1 : i64, scratch_operands = 3 : i64, tpu.core_type = #tpu.core_type<tc>, window_params = [{pipeline_mode = #tpu.pipeline_mode<synchronous>, transform_indices = @transform_0, window_bounds = array<i64: 8, 256>}, {pipeline_mode = #tpu.pipeline_mode<synchronous>, transform_indices = @transform_1, window_bounds = array<i64: 8, 256>}, {pipeline_mode = #tpu.pipeline_mode<synchronous>, transform_indices = @transform_2, window_bounds = array<i64: 128, 1024>}, {pipeline_mode = #tpu.pipeline_mode<synchronous>, transform_indices = @transform_3, window_bounds = array<i64: 256, 1024>}, {pipeline_mode = #tpu.pipeline_mode<synchronous>, transform_indices = @transform_4, window_bounds = array<i64: 1, 1024>}, {pipeline_mode = #tpu.pipeline_mode<synchronous>, transform_indices = @transform_5, window_bounds = array<i64: 256, 128>}, {pipeline_mode = #tpu.pipeline_mode<synchronous>, transform_indices = @transform_6, window_bounds = array<i64: 1, 128>}, {transform_indices = @transform_7, window_bounds = array<i64: 1, 8, 128>}, {pipeline_mode = #tpu.pipeline_mode<synchronous>, transform_indices = @transform_8, window_bounds = array<i64: 8, 256>}, {pipeline_mode = #tpu.pipeline_mode<synchronous>, transform_indices = @transform_9, window_bounds = array<i64: 8, 256>}]} {
    %c0_i32 = arith.constant 0 : i32
    %0 = arith.cmpi eq, %arg0, %c0_i32 : i32
    %1 = arith.extui %0 : i1 to i32
    %c0_i32_0 = arith.constant 0 : i32
    %2 = arith.cmpi ne, %1, %c0_i32_0 : i32
    scf.if %2 {
      %c0_54 = arith.constant 0 : index
      %c0_55 = arith.constant 0 : index
      %91 = vector.load %arg2[%c0_54, %c0_55] : memref<8x256xf32, #tpu.memory_space<vmem>>, vector<8x256xf32>
      %c0_56 = arith.constant 0 : index
      %c0_57 = arith.constant 0 : index
      %92 = vector.load %arg12[%c0_56, %c0_57] : memref<8x256xf32, #tpu.memory_space<vmem>>, vector<8x256xf32>
      tpu.vector_store %arg12[%c0_56, %c0_57], %91 {strides = array<i32>} : memref<8x256xf32, #tpu.memory_space<vmem>>, vector<8x256xf32>,
      %c0_58 = arith.constant 0 : index
      %c0_59 = arith.constant 0 : index
      %93 = vector.load %arg3[%c0_58, %c0_59] : memref<8x256xf32, #tpu.memory_space<vmem>>, vector<8x256xf32>
      %c0_60 = arith.constant 0 : index
      %c0_61 = arith.constant 0 : index
      %94 = vector.load %arg13[%c0_60, %c0_61] : memref<8x256xf32, #tpu.memory_space<vmem>>, vector<8x256xf32>
      tpu.vector_store %arg13[%c0_60, %c0_61], %93 {strides = array<i32>} : memref<8x256xf32, #tpu.memory_space<vmem>>, vector<8x256xf32>,
    } else {
    }
    %3 = arith.index_cast %arg0 : i32 to index
    %c0 = arith.constant 0 : index
    %4 = memref.load %arg1[%3, %c0] : memref<1x8xi32, #tpu.memory_space<smem>>
    %5 = arith.index_cast %4 : i32 to index
    %c0_1 = arith.constant 0 : index
    %6 = vector.load %arg4[%5, %c0_1] : memref<128x1024xf32, #tpu.memory_space<vmem>>, vector<1x1024xf32>
    %c0_2 = arith.constant 0 : index
    %c0_3 = arith.constant 0 : index
    %7 = vector.load %arg14[%c0_2, %c0_3] : memref<8x1024xf32, #tpu.memory_space<vmem>>, vector<1x1024xf32>
    tpu.vector_store %arg14[%c0_2, %c0_3], %6 {strides = array<i32>} : memref<8x1024xf32, #tpu.memory_space<vmem>>, vector<1x1024xf32>,
    %8 = arith.index_cast %arg0 : i32 to index
    %c1 = arith.constant 1 : index
    %9 = memref.load %arg1[%8, %c1] : memref<1x8xi32, #tpu.memory_space<smem>>
    %10 = arith.index_cast %9 : i32 to index
    %c0_4 = arith.constant 0 : index
    %11 = vector.load %arg4[%10, %c0_4] : memref<128x1024xf32, #tpu.memory_space<vmem>>, vector<1x1024xf32>
    %c1_5 = arith.constant 1 : index
    %c0_6 = arith.constant 0 : index
    %12 = vector.load %arg14[%c1_5, %c0_6] : memref<8x1024xf32, #tpu.memory_space<vmem>>, vector<1x1024xf32>
    tpu.vector_store %arg14[%c1_5, %c0_6], %11 {strides = array<i32>} : memref<8x1024xf32, #tpu.memory_space<vmem>>, vector<1x1024xf32>,
    %13 = arith.index_cast %arg0 : i32 to index
    %c2 = arith.constant 2 : index
    %14 = memref.load %arg1[%13, %c2] : memref<1x8xi32, #tpu.memory_space<smem>>
    %15 = arith.index_cast %14 : i32 to index
    %c0_7 = arith.constant 0 : index
    %16 = vector.load %arg4[%15, %c0_7] : memref<128x1024xf32, #tpu.memory_space<vmem>>, vector<1x1024xf32>
    %c2_8 = arith.constant 2 : index
    %c0_9 = arith.constant 0 : index
    %17 = vector.load %arg14[%c2_8, %c0_9] : memref<8x1024xf32, #tpu.memory_space<vmem>>, vector<1x1024xf32>
    tpu.vector_store %arg14[%c2_8, %c0_9], %16 {strides = array<i32>} : memref<8x1024xf32, #tpu.memory_space<vmem>>, vector<1x1024xf32>,
    %18 = arith.index_cast %arg0 : i32 to index
    %c3 = arith.constant 3 : index
    %19 = memref.load %arg1[%18, %c3] : memref<1x8xi32, #tpu.memory_space<smem>>
    %20 = arith.index_cast %19 : i32 to index
    %c0_10 = arith.constant 0 : index
    %21 = vector.load %arg4[%20, %c0_10] : memref<128x1024xf32, #tpu.memory_space<vmem>>, vector<1x1024xf32>
    %c3_11 = arith.constant 3 : index
    %c0_12 = arith.constant 0 : index
    %22 = vector.load %arg14[%c3_11, %c0_12] : memref<8x1024xf32, #tpu.memory_space<vmem>>, vector<1x1024xf32>
    tpu.vector_store %arg14[%c3_11, %c0_12], %21 {strides = array<i32>} : memref<8x1024xf32, #tpu.memory_space<vmem>>, vector<1x1024xf32>,
    %23 = arith.index_cast %arg0 : i32 to index
    %c4 = arith.constant 4 : index
    %24 = memref.load %arg1[%23, %c4] : memref<1x8xi32, #tpu.memory_space<smem>>
    %25 = arith.index_cast %24 : i32 to index
    %c0_13 = arith.constant 0 : index
    %26 = vector.load %arg4[%25, %c0_13] : memref<128x1024xf32, #tpu.memory_space<vmem>>, vector<1x1024xf32>
    %c4_14 = arith.constant 4 : index
    %c0_15 = arith.constant 0 : index
    %27 = vector.load %arg14[%c4_14, %c0_15] : memref<8x1024xf32, #tpu.memory_space<vmem>>, vector<1x1024xf32>
    tpu.vector_store %arg14[%c4_14, %c0_15], %26 {strides = array<i32>} : memref<8x1024xf32, #tpu.memory_space<vmem>>, vector<1x1024xf32>,
    %28 = arith.index_cast %arg0 : i32 to index
    %c5 = arith.constant 5 : index
    %29 = memref.load %arg1[%28, %c5] : memref<1x8xi32, #tpu.memory_space<smem>>
    %30 = arith.index_cast %29 : i32 to index
    %c0_16 = arith.constant 0 : index
    %31 = vector.load %arg4[%30, %c0_16] : memref<128x1024xf32, #tpu.memory_space<vmem>>, vector<1x1024xf32>
    %c5_17 = arith.constant 5 : index
    %c0_18 = arith.constant 0 : index
    %32 = vector.load %arg14[%c5_17, %c0_18] : memref<8x1024xf32, #tpu.memory_space<vmem>>, vector<1x1024xf32>
    tpu.vector_store %arg14[%c5_17, %c0_18], %31 {strides = array<i32>} : memref<8x1024xf32, #tpu.memory_space<vmem>>, vector<1x1024xf32>,
    %33 = arith.index_cast %arg0 : i32 to index
    %c6 = arith.constant 6 : index
    %34 = memref.load %arg1[%33, %c6] : memref<1x8xi32, #tpu.memory_space<smem>>
    %35 = arith.index_cast %34 : i32 to index
    %c0_19 = arith.constant 0 : index
    %36 = vector.load %arg4[%35, %c0_19] : memref<128x1024xf32, #tpu.memory_space<vmem>>, vector<1x1024xf32>
    %c6_20 = arith.constant 6 : index
    %c0_21 = arith.constant 0 : index
    %37 = vector.load %arg14[%c6_20, %c0_21] : memref<8x1024xf32, #tpu.memory_space<vmem>>, vector<1x1024xf32>
    tpu.vector_store %arg14[%c6_20, %c0_21], %36 {strides = array<i32>} : memref<8x1024xf32, #tpu.memory_space<vmem>>, vector<1x1024xf32>,
    %38 = arith.index_cast %arg0 : i32 to index
    %c7 = arith.constant 7 : index
    %39 = memref.load %arg1[%38, %c7] : memref<1x8xi32, #tpu.memory_space<smem>>
    %40 = arith.index_cast %39 : i32 to index
    %c0_22 = arith.constant 0 : index
    %41 = vector.load %arg4[%40, %c0_22] : memref<128x1024xf32, #tpu.memory_space<vmem>>, vector<1x1024xf32>
    %c7_23 = arith.constant 7 : index
    %c0_24 = arith.constant 0 : index
    %42 = vector.load %arg14[%c7_23, %c0_24] : memref<8x1024xf32, #tpu.memory_space<vmem>>, vector<1x1024xf32>
    tpu.vector_store %arg14[%c7_23, %c0_24], %41 {strides = array<i32>} : memref<8x1024xf32, #tpu.memory_space<vmem>>, vector<1x1024xf32>,
    %c0_25 = arith.constant 0 : index
    %c0_26 = arith.constant 0 : index
    %43 = vector.load %arg12[%c0_25, %c0_26] : memref<8x256xf32, #tpu.memory_space<vmem>>, vector<8x256xf32>
    %c0_27 = arith.constant 0 : index
    %c0_28 = arith.constant 0 : index
    %44 = vector.load %arg13[%c0_27, %c0_28] : memref<8x256xf32, #tpu.memory_space<vmem>>, vector<8x256xf32>
    %c0_29 = arith.constant 0 : index
    %c0_30 = arith.constant 0 : index
    %45 = vector.load %arg14[%c0_29, %c0_30] : memref<8x1024xf32, #tpu.memory_space<vmem>>, vector<8x1024xf32>
    %46 = arith.truncf %43 : vector<8x256xf32> to vector<8x256xbf16>
    %c0_31 = arith.constant 0 : index
    %c0_32 = arith.constant 0 : index
    %47 = vector.load %arg5[%c0_31, %c0_32] : memref<256x1024xbf16, #tpu.memory_space<vmem>>, vector<256x1024xbf16>
    %cst = arith.constant dense<0.000000e+00> : vector<8x1024xf32>
    %48 = tpu.matmul %46, %47, %cst {dimension_numbers = #tpu.dot_dimension_numbers<[1], [0], [0], [1], [0, 0, 1, 1], [], []>} : vector<8x256xbf16>, vector<256x1024xbf16>, vector<8x1024xf32> -> vector<8x1024xf32>
    %49 = arith.addf %45, %48 : vector<8x1024xf32>
    %c0_33 = arith.constant 0 : index
    %c0_34 = arith.constant 0 : index
    %50 = vector.load %arg6[%c0_33, %c0_34] : memref<1x1024xf32, #tpu.memory_space<vmem>>, vector<1x1024xf32>
    %51 = vector.broadcast %50 : vector<1x1024xf32> to vector<8x1024xf32>
    %52 = arith.addf %49, %51 : vector<8x1024xf32>
    %53 = vector.extract_strided_slice %52 {offsets = [0, 0], sizes = [8, 256], strides = [1, 1]} : vector<8x1024xf32> to vector<8x256xf32>
    %54 = arith.negf %53 : vector<8x256xf32>
    %55 = math.exp %54 : vector<8x256xf32>
    %cst_35 = arith.constant 1.000000e+00 : f32
    %56 = vector.broadcast %cst_35 : f32 to vector<8x256xf32>
    %57 = arith.addf %56, %55 : vector<8x256xf32>
    %58 = arith.divf %56, %57 : vector<8x256xf32>
    %59 = vector.extract_strided_slice %52 {offsets = [0, 256], sizes = [8, 256], strides = [1, 1]} : vector<8x1024xf32> to vector<8x256xf32>
    %60 = arith.negf %59 : vector<8x256xf32>
    %61 = math.exp %60 : vector<8x256xf32>
    %cst_36 = arith.constant 1.000000e+00 : f32
    %62 = vector.broadcast %cst_36 : f32 to vector<8x256xf32>
    %63 = arith.addf %62, %61 : vector<8x256xf32>
    %64 = arith.divf %62, %63 : vector<8x256xf32>
    %65 = vector.extract_strided_slice %52 {offsets = [0, 512], sizes = [8, 256], strides = [1, 1]} : vector<8x1024xf32> to vector<8x256xf32>
    %66 = math.tanh %65 : vector<8x256xf32>
    %67 = vector.extract_strided_slice %52 {offsets = [0, 768], sizes = [8, 256], strides = [1, 1]} : vector<8x1024xf32> to vector<8x256xf32>
    %68 = arith.negf %67 : vector<8x256xf32>
    %69 = math.exp %68 : vector<8x256xf32>
    %cst_37 = arith.constant 1.000000e+00 : f32
    %70 = vector.broadcast %cst_37 : f32 to vector<8x256xf32>
    %71 = arith.addf %70, %69 : vector<8x256xf32>
    %72 = arith.divf %70, %71 : vector<8x256xf32>
    %73 = arith.mulf %64, %44 : vector<8x256xf32>
    %74 = arith.mulf %58, %66 : vector<8x256xf32>
    %75 = arith.addf %73, %74 : vector<8x256xf32>
    %76 = math.tanh %75 : vector<8x256xf32>
    %77 = arith.mulf %72, %76 : vector<8x256xf32>
    %c0_38 = arith.constant 0 : index
    %c0_39 = arith.constant 0 : index
    %78 = vector.load %arg12[%c0_38, %c0_39] : memref<8x256xf32, #tpu.memory_space<vmem>>, vector<8x256xf32>
    tpu.vector_store %arg12[%c0_38, %c0_39], %77 {strides = array<i32>} : memref<8x256xf32, #tpu.memory_space<vmem>>, vector<8x256xf32>,
    %c0_40 = arith.constant 0 : index
    %c0_41 = arith.constant 0 : index
    %79 = vector.load %arg13[%c0_40, %c0_41] : memref<8x256xf32, #tpu.memory_space<vmem>>, vector<8x256xf32>
    tpu.vector_store %arg13[%c0_40, %c0_41], %75 {strides = array<i32>} : memref<8x256xf32, #tpu.memory_space<vmem>>, vector<8x256xf32>,
    %80 = arith.truncf %77 : vector<8x256xf32> to vector<8x256xbf16>
    %c0_42 = arith.constant 0 : index
    %c0_43 = arith.constant 0 : index
    %81 = vector.load %arg7[%c0_42, %c0_43] : memref<256x128xbf16, #tpu.memory_space<vmem>>, vector<256x128xbf16>
    %cst_44 = arith.constant dense<0.000000e+00> : vector<8x128xf32>
    %82 = tpu.matmul %80, %81, %cst_44 {dimension_numbers = #tpu.dot_dimension_numbers<[1], [0], [0], [1], [0, 0, 1, 1], [], []>} : vector<8x256xbf16>, vector<256x128xbf16>, vector<8x128xf32> -> vector<8x128xf32>
    %c0_45 = arith.constant 0 : index
    %c0_46 = arith.constant 0 : index
    %83 = vector.load %arg8[%c0_45, %c0_46] : memref<1x128xf32, #tpu.memory_space<vmem>>, vector<1x128xf32>
    %84 = vector.broadcast %83 : vector<1x128xf32> to vector<8x128xf32>
    %85 = arith.addf %82, %84 : vector<8x128xf32>
    %c0_47 = arith.constant 0 : index
    %c0_48 = arith.constant 0 : index
    %c0_49 = arith.constant 0 : index
    %86 = vector.load %arg9[%c0_47, %c0_48, %c0_49] : memref<1x8x128xf32, #tpu.memory_space<vmem>>, vector<1x8x128xf32>
    %87 = vector.shape_cast %86 : vector<1x8x128xf32> to vector<8x128xf32>
    %88 = vector.shape_cast %85 : vector<8x128xf32> to vector<1x8x128xf32>
    tpu.vector_store %arg9[%c0_47, %c0_48, %c0_49], %88 {strides = array<i32>} : memref<1x8x128xf32, #tpu.memory_space<vmem>>, vector<1x8x128xf32>,
    %c0_50 = arith.constant 0 : index
    %c0_51 = arith.constant 0 : index
    %89 = vector.load %arg10[%c0_50, %c0_51] : memref<8x256xf32, #tpu.memory_space<vmem>>, vector<8x256xf32>
    tpu.vector_store %arg10[%c0_50, %c0_51], %77 {strides = array<i32>} : memref<8x256xf32, #tpu.memory_space<vmem>>, vector<8x256xf32>,
    %c0_52 = arith.constant 0 : index
    %c0_53 = arith.constant 0 : index
    %90 = vector.load %arg11[%c0_52, %c0_53] : memref<8x256xf32, #tpu.memory_space<vmem>>, vector<8x256xf32>
    tpu.vector_store %arg11[%c0_52, %c0_53], %75 {strides = array<i32>} : memref<8x256xf32, #tpu.memory_space<vmem>>, vector<8x256xf32>,
    return
  }
  func.func @transform_0(%arg0: i32, %arg1: memref<1x8xi32, #tpu.memory_space<smem>>) -> (i32, i32) {
    %c0_i32 = arith.constant 0 : i32
    %c0_i32_0 = arith.constant 0 : i32
    %c0_i32_1 = arith.constant 0 : i32
    return %c0_i32, %c0_i32_0 : i32, i32
  }
  func.func @transform_1(%arg0: i32, %arg1: memref<1x8xi32, #tpu.memory_space<smem>>) -> (i32, i32) {
    %c0_i32 = arith.constant 0 : i32
    %c0_i32_0 = arith.constant 0 : i32
    %c0_i32_1 = arith.constant 0 : i32
    return %c0_i32, %c0_i32_0 : i32, i32
  }
  func.func @transform_2(%arg0: i32, %arg1: memref<1x8xi32, #tpu.memory_space<smem>>) -> (i32, i32) {
    %c0_i32 = arith.constant 0 : i32
    %c0_i32_0 = arith.constant 0 : i32
    %c0_i32_1 = arith.constant 0 : i32
    return %c0_i32, %c0_i32_0 : i32, i32
  }
  func.func @transform_3(%arg0: i32, %arg1: memref<1x8xi32, #tpu.memory_space<smem>>) -> (i32, i32) {
    %c0_i32 = arith.constant 0 : i32
    %c0_i32_0 = arith.constant 0 : i32
    %c0_i32_1 = arith.constant 0 : i32
    return %c0_i32, %c0_i32_0 : i32, i32
  }
  func.func @transform_4(%arg0: i32, %arg1: memref<1x8xi32, #tpu.memory_space<smem>>) -> (i32, i32) {
    %c0_i32 = arith.constant 0 : i32
    %c0_i32_0 = arith.constant 0 : i32
    %c0_i32_1 = arith.constant 0 : i32
    return %c0_i32, %c0_i32_0 : i32, i32
  }
  func.func @transform_5(%arg0: i32, %arg1: memref<1x8xi32, #tpu.memory_space<smem>>) -> (i32, i32) {
    %c0_i32 = arith.constant 0 : i32
    %c0_i32_0 = arith.constant 0 : i32
    %c0_i32_1 = arith.constant 0 : i32
    return %c0_i32, %c0_i32_0 : i32, i32
  }
  func.func @transform_6(%arg0: i32, %arg1: memref<1x8xi32, #tpu.memory_space<smem>>) -> (i32, i32) {
    %c0_i32 = arith.constant 0 : i32
    %c0_i32_0 = arith.constant 0 : i32
    %c0_i32_1 = arith.constant 0 : i32
    return %c0_i32, %c0_i32_0 : i32, i32
  }
  func.func @transform_7(%arg0: i32, %arg1: memref<1x8xi32, #tpu.memory_space<smem>>) -> (i32, i32, i32) {
    %c0_i32 = arith.constant 0 : i32
    %c0_i32_0 = arith.constant 0 : i32
    %c0_i32_1 = arith.constant 0 : i32
    return %arg0, %c0_i32, %c0_i32_0 : i32, i32, i32
  }
  func.func @transform_8(%arg0: i32, %arg1: memref<1x8xi32, #tpu.memory_space<smem>>) -> (i32, i32) {
    %c0_i32 = arith.constant 0 : i32
    %c0_i32_0 = arith.constant 0 : i32
    %c0_i32_1 = arith.constant 0 : i32
    return %c0_i32, %c0_i32_0 : i32, i32
  }
  func.func @transform_9(%arg0: i32, %arg1: memref<1x8xi32, #tpu.memory_space<smem>>) -> (i32, i32) {
    %c0_i32 = arith.constant 0 : i32
    %c0_i32_0 = arith.constant 0 : i32
    %c0_i32_1 = arith.constant 0 : i32
    return %c0_i32, %c0_i32_0 : i32, i32
  }
}

</mosaic_0001>

<bundles_post_ra>
// kernel: tpu_custom_call.1
= control target key start
LH: loop header
LB: loop body
LE: loop exit
PB: predicated region body
PF: predicated region fallthrough
CT: control target
= control target key end

     0   :  { %s2320_s0 = inlined_call_operand.hbm [shape: s32[1,8], index: 0, kind: input, shape index: {}]   ;;  %s2321_s1 = inlined_call_operand.hbm [shape: f32[8,256], index: 1, kind: input, shape index: {}]   ;;  %s2322_s2 = inlined_call_operand.hbm [shape: f32[8,256], index: 2, kind: input, shape index: {}]   ;;  %s2323_s3 = inlined_call_operand.hbm [shape: f32[128,1024], index: 3, kind: input, shape index: {}]   ;;  %s2324_s4 = inlined_call_operand.hbm [shape: bf16[256,1024], index: 4, kind: input, shape index: {}]   ;;  %s2325_s5 = inlined_call_operand.vmem [shape: f32[1,1024], index: 5, kind: input, shape index: {}]   ;;  %s2326_s6 = inlined_call_operand.hbm [shape: bf16[256,128], index: 6, kind: input, shape index: {}]   ;;  %s2327_s7 = inlined_call_operand.vmem [shape: f32[1,128], index: 7, kind: input, shape index: {}]   ;;  %s2328_s8 = inlined_call_operand.hbm [shape: f32[1,8,128], index: 8, kind: output, shape index: {0}]   ;;  %s2329_s9 = inlined_call_operand.hbm [shape: f32[8,256], index: 9, kind: output, shape index: {1}]   ;;  %s2330_s10 = inlined_call_operand.hbm [shape: f32[8,256], index: 10, kind: output, shape index: {2}]  }
   0x1   :  { %s1812_s15 = scalar_lea.hbm %s2320_s0, 16 }
   0x2   :  { %p1813_p0 = scmp.ne.s32.totalorder %s2320_s0, %s1812_s15  ;;  %p1816_p1 = scmp.lt.u32.totalorder %s1812_s15, %s2320_s0 }
   0x4   :  { %p1818_p2 = pnand %p1816_p1, %p1813_p0 }
   0x6   :  { %1821 = shalt.err (!%p1818_p2)  }
   0x7   :  { %s2010_s20 = smov [#allocation6]  }
   0x8   :  { %17 = dma.hbm_to_smem %s2320_s0, 16, %s2010_s20, [#allocation5] }
   0x9   :  { %1998 = dma.done.wait [#allocation5], 16 }
   0xa   :  { %1999 = vsyncadd [#allocation5], 4294967280 }
   0xb   :  { %19 = sfence }
   0xc   :  { %20 = vsyncpa [#allocation8], 0 }
   0xd   :  { %21 = vsyncpa [#allocation11], 0 }
   0xe   :  { %22 = vsyncpa [#allocation14], 0 }
   0xf   :  { %23 = vsyncpa [#allocation9], 0 }
  0x10   :  { %24 = vsyncpa [#allocation18], 0  ;;  %s2011_s23 = smov [#allocation10]   ;;  %s2012_s25 = smov [#allocation13]  }
  0x11   :  { %s41_s24 = sshll.u32 %s2011_s23, 4  ;;  %s62_s26 = sshll.u32 %s2012_s25, 4  ;;  %s42_s24 = int_to_ptr.vmem [resolvable:$true] %s41_s24  ;;  %s2091_s26 = int_to_ptr.vmem [resolvable:$true] %s62_s26 }
  0x12   :  { %s1822_s29 = scalar_lea.hbm %s2322_s2, 256 }
  0x13   :  { %p1823_p3 = scmp.ne.s32.totalorder %s2322_s2, %s1822_s29  ;;  %p1826_p4 = scmp.lt.u32.totalorder %s1822_s29, %s2322_s2 }
  0x15   :  { %p1828_p5 = pnand %p1826_p4, %p1823_p3 }
  0x17   :  { %1831 = shalt.err (!%p1828_p5)
}
  0x18   :  { %s1832_s13 = scalar_lea.vmem %s42_s24, 256  ;;  %p1837_p7 = scmp.lt.s32.totalorder %s42_s24, %s42_s24 }
  0x19   :  { %p1833_p6 = scmp.ne.s32.totalorder %s42_s24, %s1832_s13  ;;  %p1838_p8 = scmp.lt.s32.totalorder %s1832_s13, %s1832_s13 }
  0x1b   :  { %p1839_p9 = por %p1838_p8, %p1837_p7 }
  0x1d   :  { %p1840_p10 = pnand %p1839_p9, %p1833_p6 }
  0x1f   :  { %1843 = shalt.err (!%p1840_p10)
}
  0x20   :  { %44 = dma.hbm_to_vmem [thread:$0]  %s2322_s2, 256, %s42_s24, [#allocation11]  }
  0x21   :  { %s1844_s18 = scalar_lea.hbm %s2324_s4, 16384 }
  0x22   :  { %p1845_p11 = scmp.ne.s32.totalorder %s2324_s4, %s1844_s18  ;;  %p1848_p12 = scmp.lt.u32.totalorder %s1844_s18, %s2324_s4 }
  0x24   :  { %p1850_p13 = pnand %p1848_p12, %p1845_p11 }
  0x26   :  { %1853 = shalt.err (!%p1850_p13)
}
  0x27   :  { %s1854_s23 = scalar_lea.vmem %s2091_s26, 16384  ;;  %p1859_p1 = scmp.lt.s32.totalorder %s2091_s26, %s2091_s26 }
  0x28   :  { %p1855_p0 = scmp.ne.s32.totalorder %s2091_s26, %s1854_s23  ;;  %p1860_p2 = scmp.lt.s32.totalorder %s1854_s23, %s1854_s23 }
  0x2a   :  { %p1861_p3 = por %p1860_p2, %p1859_p1 }
  0x2c   :  { %p1862_p4 = pnand %p1861_p3, %p1855_p0 }
  0x2e   :  { %1865 = shalt.err (!%p1862_p4)
}
  0x2f   :  { %s2013_s2 = smov 512   ;;  %s2014_s24 = smov 32  }
  0x30   :  { %68 = dma.hbm_to_vmem [thread:$0]  %s2324_s4, 16384, %s2091_s26, [#allocation14], %s2013_s2, %s2013_s2, %s2014_s24  }
  0x31   :  { %s2015_s28 = smov [#allocation7]   ;;  %s2016_s0 = smov [#allocation12]  }
  0x32   :  { %s31_s29 = sshll.u32 %s2015_s28, 4  ;;  %s50_s30 = sshll.u32 %s2016_s0, 4  ;;  %s32_s29 = int_to_ptr.vmem [resolvable:$true] %s31_s29  ;;  %s2122_s30 = int_to_ptr.vmem [resolvable:$true] %s50_s30 }
  0x33   :  { %s1866_s13 = scalar_lea.hbm %s2321_s1, 256 }
  0x34   :  { %p1867_p5 = scmp.ne.s32.totalorder %s2321_s1, %s1866_s13  ;;  %p1870_p6 = scmp.lt.u32.totalorder %s1866_s13, %s2321_s1 }
  0x36   :  { %p1872_p7 = pnand %p1870_p6, %p1867_p5 }
  0x38   :  { %1875 = shalt.err (!%p1872_p7)
}
  0x39   :  { %s1876_s4 = scalar_lea.vmem %s32_s29, 256  ;;  %p1881_p9 = scmp.lt.s32.totalorder %s32_s29, %s32_s29 }
  0x3a   :  { %p1877_p8 = scmp.ne.s32.totalorder %s32_s29, %s1876_s4  ;;  %p1882_p10 = scmp.lt.s32.totalorder %s1876_s4, %s1876_s4 }
  0x3c   :  { %p1883_p11 = por %p1882_p10, %p1881_p9 }
  0x3e   :  { %p1884_p12 = pnand %p1883_p11, %p1877_p8 }
  0x40   :  { %1887 = shalt.err (!%p1884_p12)
}
  0x41   :  { %34 = dma.hbm_to_vmem [thread:$0]  %s2321_s1, 256, %s32_s29, [#allocation8]  }
  0x42   :  { %s1888_s21 = scalar_lea.hbm %s2323_s3, 16384 }
  0x43   :  { %p1889_p13 = scmp.ne.s32.totalorder %s2323_s3, %s1888_s21  ;;  %p1892_p0 = scmp.lt.u32.totalorder %s1888_s21, %s2323_s3 }
  0x45   :  { %p1894_p1 = pnand %p1892_p0, %p1889_p13 }
  0x47   :  { %1897 = shalt.err (!%p1894_p1)
}
  0x48   :  { %s1898_s25 = scalar_lea.vmem %s2122_s30, 16384  ;;  %p1903_p3 = scmp.lt.s32.totalorder %s2122_s30, %s2122_s30 }
  0x49   :  { %p1899_p2 = scmp.ne.s32.totalorder %s2122_s30, %s1898_s25  ;;  %p1904_p4 = scmp.lt.s32.totalorder %s1898_s25, %s1898_s25 }
  0x4b   :  { %p1905_p5 = por %p1904_p4, %p1903_p3 }
  0x4d   :  { %p1906_p6 = pnand %p1905_p5, %p1899_p2 }
  0x4f   :  { %1909 = shalt.err (!%p1906_p6)
}
  0x50   :  { %s2017_s1 = smov 1024   ;;  %s2018_s27 = smov 64  }
  0x51   :  { %56 = dma.hbm_to_vmem [thread:$0]  %s2323_s3, 16384, %s2122_s30, [#allocation11], %s2017_s1, %s2017_s1, %s2018_s27  }
  0x52   :  { %s2019_s0 = smov [#allocation15]   ;;  %s1910_s14 = scalar_lea.hbm %s2326_s6, 2048 }
  0x53   :  { %s76_s11 = sshll.u32 %s2019_s0, 4  ;;  %p1911_p7 = scmp.ne.s32.totalorder %s2326_s6, %s1910_s14  ;;  %s77_s11 = int_to_ptr.vmem [resolvable:$true] %s76_s11 }
  0x54   :  { %p1914_p8 = scmp.lt.u32.totalorder %s1910_s14, %s2326_s6 }
  0x56   :  { %p1916_p9 = pnand %p1914_p8, %p1911_p7 }
  0x58   :  { %1919 = shalt.err (!%p1916_p9)
}
  0x59   :  { %s1920_s26 = scalar_lea.vmem %s77_s11, 2048  ;;  %p1925_p11 = scmp.lt.s32.totalorder %s77_s11, %s77_s11 }
  0x5a   :  { %p1921_p10 = scmp.ne.s32.totalorder %s77_s11, %s1920_s26  ;;  %p1926_p12 = scmp.lt.s32.totalorder %s1920_s26, %s1920_s26 }
  0x5c   :  { %p1927_p13 = por %p1926_p12, %p1925_p11 }
  0x5e   :  { %p1928_p0 = pnand %p1927_p13, %p1921_p10 }
  0x60   :  { %1931 = shalt.err (!%p1928_p0)
}
  0x61   :  { %s2020_s3 = smov 4  }
  0x62   :  { %82 = dma.hbm_to_vmem [thread:$0]  %s2326_s6, 2048, %s77_s11, [#allocation14], %s2018_s27, %s2018_s27, %s2020_s3  }
  0x63   :  { %2000 = dma.done.wait [#allocation8], 256  }
  0x64   :  { %2001 = vsyncadd [#allocation8], 4294967040 }
  0x65   :  { %2002 = dma.done.wait [#allocation11], 16640  }
  0x66   :  { %2003 = vsyncadd [#allocation11], 4294950656 }
  0x67   :  { %2004 = dma.done.wait [#allocation14], 18432  }
  0x68   :  { %2005 = vsyncadd [#allocation14], 4294948864  ;;  %v254_v0 = vld [vmem:[#allocation13] sm:$0xff]  ;;  %v255_v2 = vld [vmem:[#allocation13 + $0x8] sm:$0xff]  ;;  %s2165_s6 = sld [smem:[#allocation6]]  ;;  %s2167_s19 = sld [smem:[#allocation6 + $0x1]] }
  0x69   :  { %v258_v1 = vld [vmem:[#allocation13 + $0x20] sm:$0xff]  ;;  %v259_v4 = vld [vmem:[#allocation13 + $0x28] sm:$0xff]  ;;  %s2169_s20 = sld [smem:[#allocation6 + $0x2]]  ;;  %s2173_s23 = sld [smem:[#allocation6 + $0x3]] }
  0x6a   :  { %v1570_v3 = vcombine.high %v254_v0, %v258_v1  ;;  %v1569_v5 = vcombine.low %v254_v0, %v258_v1  ;;  %v262_v6 = vld [vmem:[#allocation13 + $0x40] sm:$0xff]  ;;  %v1572_v8 = vcombine.high %v255_v2, %v259_v4  ;;  %v1571_v9 = vcombine.low %v255_v2, %v259_v4  ;;  %v263_v11 = vld [vmem:[#allocation13 + $0x48] sm:$0xff]  ;;  %s2175_s2 = sld [smem:[#allocation6 + $0x4]]  ;;  %s2183_s29 = sld [smem:[#allocation6 + $0x5]] }
  0x6b   :  { %v266_v7 = vld [vmem:[#allocation13 + $0x60] sm:$0xff]  ;;  %v267_v12 = vld [vmem:[#allocation13 + $0x68] sm:$0xff]  ;;  %s2187_s11 = sld [smem:[#allocation6 + $0x6]]  ;;  %s2192_s13 = sld [smem:[#allocation6 + $0x7]] }
  0x6c   :  { %v1578_v10 = vcombine.high %v262_v6, %v266_v7  ;;  %v270_v13 = vld [vmem:[#allocation13 + $0x80] sm:$0xff]  ;;  %1022 = vmatprep.subr.bf16.mxu0 %v1570_v3  ;;  %v1580_v14 = vcombine.high %v263_v11, %v267_v12  ;;  %v271_v16 = vld [vmem:[#allocation13 + $0x88] sm:$0xff]  ;;  %1063 = vmatprep.subr.bf16.mxu1 %v1572_v8  ;;  %v1577_v18 = vcombine.low %v262_v6, %v266_v7 }
  0x6d   :  { %v274_v15 = vld [vmem:[#allocation13 + $0xa0] sm:$0xff]  ;;  %v275_v17 = vld [vmem:[#allocation13 + $0xa8] sm:$0xff]  ;;  %1023 = vmatpush1.bf16.msra.mxu0 %v1569_v5  ;;  %1064 = vmatpush1.bf16.msra.mxu1 %v1571_v9  ;;  %v1579_v19 = vcombine.low %v263_v11, %v267_v12 }
  0x6e   :  { %1024 = vmatprep.subr.bf16.mxu0 %v1578_v10  ;;  %v1586_v20 = vcombine.high %v270_v13, %v274_v15  ;;  %1065 = vmatprep.subr.bf16.mxu1 %v1580_v14  ;;  %v1588_v21 = vcombine.high %v271_v16, %v275_v17  ;;  %v278_v22 = vld [vmem:[#allocation13 + $0xc0] sm:$0xff]  ;;  %v279_v24 = vld [vmem:[#allocation13 + $0xc8] sm:$0xff]  ;;  %v1585_v26 = vcombine.low %v270_v13, %v274_v15  ;;  %s115_s21 = sshra.s32 %s2165_s6, 3  ;;  %s130_s22 = sshra.s32 %s2167_s19, 3 }
  0x6f   :  { %v282_v23 = vld [vmem:[#allocation13 + $0xe0] sm:$0xff]  ;;  %v283_v25 = vld [vmem:[#allocation13 + $0xe8] sm:$0xff]  ;;  %v1587_v27 = vcombine.low %v271_v16, %v275_v17  ;;  %s118_s24 = sand.u32 7, %s2165_s6  ;;  %s1720_s25 = sshll.u32 %s115_s21, 6 }
  0x70   :  { %v1594_v28 = vcombine.high %v278_v22, %v282_v23  ;;  %v1596_v29 = vcombine.high %v279_v24, %v283_v25  ;;  %v286_v30 = vld [vmem:[#allocation13 + $0x100] sm:$0xff]  ;;  %v287_v32 = vld [vmem:[#allocation13 + $0x108] sm:$0xff]  ;;  %v1593_v34 = vcombine.low %v278_v22, %v282_v23  ;;  %v1595_v35 = vcombine.low %v279_v24, %v283_v25  ;;  %s133_s1 = sand.u32 7, %s2167_s19  ;;  %s1721_s27 = sshll.u32 %s130_s22, 6 }
  0x71   :  { %1025 = vmatpush1.bf16.msra.mxu0 %v1577_v18  ;;  %1066 = vmatpush1.bf16.msra.mxu1 %v1579_v19  ;;  %v290_v31 = vld [vmem:[#allocation13 + $0x120] sm:$0xff]  ;;  %v291_v33 = vld [vmem:[#allocation13 + $0x128] sm:$0xff]  ;;  %s146_s28 = sshra.s32 %s2169_s20, 3  ;;  %s2185_s0 = sadd.s32 %s1720_s25, %s118_s24 }
  0x72   :  { %1026 = vmatprep.subr.bf16.mxu0 %v1586_v20  ;;  %1067 = vmatprep.subr.bf16.mxu1 %v1588_v21  ;;  %v1602_v36 = vcombine.high %v286_v30, %v290_v31  ;;  %v1604_v37 = vcombine.high %v287_v32, %v291_v33  ;;  %v294_v38 = vld [vmem:[#allocation13 + $0x140] sm:$0xff]  ;;  %v295_v40 = vld [vmem:[#allocation13 + $0x148] sm:$0xff]  ;;  %v1601_v42 = vcombine.low %v286_v30, %v290_v31  ;;  %s2190_s12 = sadd.s32 %s1721_s27, %s133_s1  ;;  %s149_s14 = sand.u32 7, %s2169_s20 }
  0x73   :  { %v298_v39 = vld [vmem:[#allocation13 + $0x160] sm:$0xff]  ;;  %v299_v41 = vld [vmem:[#allocation13 + $0x168] sm:$0xff]  ;;  %v1603_v43 = vcombine.low %v287_v32, %v291_v33  ;;  %s1722_s15 = sshll.u32 %s146_s28, 6  ;;  %s162_s16 = sshra.s32 %s2173_s23, 3 }
  0x74   :  { %v1610_v44 = vcombine.high %v294_v38, %v298_v39  ;;  %v1612_v45 = vcombine.high %v295_v40, %v299_v41  ;;  %v302_v46 = vld [vmem:[#allocation13 + $0x180] sm:$0xff]  ;;  %v303_v48 = vld [vmem:[#allocation13 + $0x188] sm:$0xff]  ;;  %v1609_v50 = vcombine.low %v294_v38, %v298_v39  ;;  %v1611_v51 = vcombine.low %v295_v40, %v299_v41  ;;  %s2196_s17 = sadd.s32 %s1722_s15, %s149_s14  ;;  %s165_s4 = sand.u32 7, %s2173_s23 }
  0x75   :  { %1027 = vmatpush1.bf16.msra.mxu0 %v1585_v26  ;;  %1068 = vmatpush1.bf16.msra.mxu1 %v1587_v27  ;;  %v306_v47 = vld [vmem:[#allocation13 + $0x1a0] sm:$0xff]  ;;  %v307_v49 = vld [vmem:[#allocation13 + $0x1a8] sm:$0xff]  ;;  %s178_s26 = sshra.s32 %s2175_s2, 3  ;;  %s2200_s3 = sshll.u32 %s162_s16, 6 }
  0x76   :  { %1028 = vmatprep.subr.bf16.mxu0 %v1594_v28  ;;  %1069 = vmatprep.subr.bf16.mxu1 %v1596_v29  ;;  %v1618_v52 = vcombine.high %v302_v46, %v306_v47  ;;  %v106_v53 = vld [vmem:[#allocation7 + $0x8] sm:$0xff]  ;;  %v1620_v54 = vcombine.high %v303_v48, %v307_v49  ;;  %v310_v55 = vld [vmem:[#allocation13 + $0x1c0] sm:$0xff]  ;;  %v1617_v60 = vcombine.low %v302_v46, %v306_v47  ;;  %s194_s30 = sshra.s32 %s2183_s29, 3  ;;  %s181_s18 = sand.u32 7, %s2175_s2 }
  0x77   :  { %v314_v56 = vld [vmem:[#allocation13 + $0x1e0] sm:$0xff]  ;;  %v2177_v57 = vpack.c.bf16 %v106_v53, %v106_v53  ;;  %v311_v58 = vld [vmem:[#allocation13 + $0x1c8] sm:$0xff]  ;;  %v1619_v61 = vcombine.low %v303_v48, %v307_v49  ;;  %s210_s6 = sshra.s32 %s2187_s11, 3  ;;  %s1724_s19 = sshll.u32 %s178_s26, 6 }
  0x78   :  { %v315_v59 = vld [vmem:[#allocation13 + $0x1e8] sm:$0xff]  ;;  %v1626_v62 = vcombine.high %v310_v55, %v314_v56  ;;  %v318_v0 = vld [vmem:[#allocation13 + $0x200] sm:$0xff]  ;;  %v1625_v4 = vcombine.low %v310_v55, %v314_v56  ;;  %s226_s20 = sshra.s32 %s2192_s13, 3  ;;  %s197_s21 = sand.u32 7, %s2183_s29 }
  0x79   :  { %1029 = vmatpush1.bf16.msra.mxu0 %v1593_v34  ;;  %1070 = vmatpush1.bf16.msra.mxu1 %v1595_v35  ;;  %v1628_v63 = vcombine.high %v311_v58, %v315_v59  ;;  %v322_v1 = vld [vmem:[#allocation13 + $0x220] sm:$0xff]  ;;  %v319_v2 = vld [vmem:[#allocation13 + $0x208] sm:$0xff]  ;;  %v1627_v5 = vcombine.low %v311_v58, %v315_v59  ;;  %s1725_s22 = sshll.u32 %s194_s30, 6  ;;  %s213_s24 = sand.u32 7, %s2187_s11 }
  0x7a   :  { %1030 = vmatprep.subr.bf16.mxu0 %v1602_v36  ;;  %1071 = vmatprep.subr.bf16.mxu1 %v1604_v37  ;;  %v323_v3 = vld [vmem:[#allocation13 + $0x228] sm:$0xff]  ;;  %v1634_v6 = vcombine.high %v318_v0, %v322_v1  ;;  %v326_v8 = vld [vmem:[#allocation13 + $0x240] sm:$0xff]  ;;  %v1633_v12 = vcombine.low %v318_v0, %v322_v1  ;;  %s1726_s25 = sshll.u32 %s210_s6, 6  ;;  %s229_s2 = sand.u32 7, %s2192_s13 }
  0x7b   :  { %1054 = vmatprep.mubr.bf16.mxu0 %v2177_v57  ;;  %1095 = vmatprep.mubr.bf16.mxu1 %v2177_v57  ;;  %v1636_v7 = vcombine.high %v319_v2, %v323_v3  ;;  %v330_v9 = vld [vmem:[#allocation13 + $0x260] sm:$0xff]  ;;  %v327_v10 = vld [vmem:[#allocation13 + $0x248] sm:$0xff]  ;;  %v1635_v13 = vcombine.low %v319_v2, %v323_v3  ;;  %s1727_s1 = sshll.u32 %s226_s20, 6  ;;  %s2212_s27 = sadd.s32 %s2200_s3, %s165_s4 }
  0x7c   :  { %v331_v11 = vld [vmem:[#allocation13 + $0x268] sm:$0xff]  ;;  %v1642_v14 = vcombine.high %v326_v8, %v330_v9  ;;  %v334_v16 = vld [vmem:[#allocation13 + $0x280] sm:$0xff]  ;;  %v1641_v20 = vcombine.low %v326_v8, %v330_v9  ;;  %s2214_s28 = sadd.s32 %s1724_s19, %s181_s18  ;;  %s2216_s29 = sadd.s32 %s1725_s22, %s197_s21 }
  0x7d   :  { %1031 = vmatpush1.bf16.msra.mxu0 %v1601_v42  ;;  %1072 = vmatpush1.bf16.msra.mxu1 %v1603_v43  ;;  %v1644_v15 = vcombine.high %v327_v10, %v331_v11  ;;  %v338_v17 = vld [vmem:[#allocation13 + $0x2a0] sm:$0xff]  ;;  %v335_v18 = vld [vmem:[#allocation13 + $0x288] sm:$0xff]  ;;  %v1643_v21 = vcombine.low %v327_v10, %v331_v11  ;;  %s2218_s11 = sadd.s32 %s1726_s25, %s213_s24  ;;  %s2220_s13 = sadd.s32 %s1727_s1, %s229_s2 }
  0x7e   :  { %1032 = vmatprep.subr.bf16.mxu0 %v1610_v44  ;;  %1073 = vmatprep.subr.bf16.mxu1 %v1612_v45  ;;  %v339_v19 = vld [vmem:[#allocation13 + $0x2a8] sm:$0xff]  ;;  %v1650_v22 = vcombine.high %v334_v16, %v338_v17  ;;  %v342_v24 = vld [vmem:[#allocation13 + $0x2c0] sm:$0xff]  ;;  %v1649_v28 = vcombine.low %v334_v16, %v338_v17  ;;  %s122_s23 = scalar_lea.vmem [#allocation12], %s2185_s0  ;;  %s137_s14 = scalar_lea.vmem [#allocation12], %s2190_s12 }
  0x7f   :  { %v1652_v23 = vcombine.high %v335_v18, %v339_v19  ;;  %v346_v25 = vld [vmem:[#allocation13 + $0x2e0] sm:$0xff]  ;;  %v343_v26 = vld [vmem:[#allocation13 + $0x2c8] sm:$0xff]  ;;  %v1651_v29 = vcombine.low %v335_v18, %v339_v19  ;;  %s153_s0 = scalar_lea.vmem [#allocation12], %s2196_s17  ;;  %s169_s12 = scalar_lea.vmem [#allocation12], %s2212_s27 }
  0x80   :  { %v347_v27 = vld [vmem:[#allocation13 + $0x2e8] sm:$0xff]  ;;  %v1658_v30 = vcombine.high %v342_v24, %v346_v25  ;;  %v2222_v31 = vld [vmem:[#allocation13 + $0x300] sm:$0xff]  ;;  %v1657_v37 = vcombine.low %v342_v24, %v346_v25  ;;  %s185_s15 = scalar_lea.vmem [#allocation12], %s2214_s28  ;;  %s201_s16 = scalar_lea.vmem [#allocation12], %s2216_s29 }
  0x81   :  { %1033 = vmatpush1.bf16.msra.mxu0 %v1609_v50  ;;  %1074 = vmatpush1.bf16.msra.mxu1 %v1611_v51  ;;  %v1660_v32 = vcombine.high %v343_v26, %v347_v27  ;;  %v2224_v33 = vld [vmem:[#allocation13 + $0x320] sm:$0xff]  ;;  %v2226_v34 = vld [vmem:[#allocation13 + $0x308] sm:$0xff]  ;;  %v1659_v42 = vcombine.low %v343_v26, %v347_v27  ;;  %s217_s17 = scalar_lea.vmem [#allocation12], %s2218_s11  ;;  %s233_s4 = scalar_lea.vmem [#allocation12], %s2220_s13  ;;  %v257_v26 = vld [vmem:[#allocation13 + $0x18] sm:$0xff] }
  0x82   :  { %1034 = vmatprep.subr.bf16.mxu0 %v1618_v52  ;;  %1075 = vmatprep.subr.bf16.mxu1 %v1620_v54  ;;  %v2228_v35 = vld [vmem:[#allocation13 + $0x328] sm:$0xff]  ;;  %v2231_v38 = vld [vmem:[#allocation13 + $0x340] sm:$0xff]  ;;  %v1666_v43 = vcombine.high %v2222_v31, %v2224_v33  ;;  %v1665_v56 = vcombine.low %v2222_v31, %v2224_v33  ;;  %v261_v27 = vld [vmem:[#allocation13 + $0x38] sm:$0xff] }
  0x83   :  { %v123_v36 = vld [vmem:[%s122_s23] ss:$8 sm:$0xf]  ;;  %v1668_v49 = vcombine.high %v2226_v34, %v2228_v35  ;;  %v1576_v33 = vcombine.high %v257_v26, %v261_v27 }
  0x84   :  { %v2233_v39 = vld [vmem:[#allocation13 + $0x360] sm:$0xff]  ;;  %v2238_v44 = vld [vmem:[#allocation13 + $0x348] sm:$0xff] }
  0x85   :  { %1035 = vmatpush1.bf16.msra.mxu0 %v1617_v60  ;;  %1076 = vmatpush1.bf16.msra.mxu1 %v1619_v61  ;;  %v124_v40 = vld [vmem:[%s122_s23] ss:$8 sm:$0xf0]  ;;  %v1674_v0 = vcombine.high %v2231_v38, %v2233_v39 }
  0x86   :  { %1036 = vmatprep.subr.bf16.mxu0 %v1626_v62  ;;  %1077 = vmatprep.subr.bf16.mxu1 %v1628_v63  ;;  %v138_v41 = vld [vmem:[%s137_s14] ss:$8 sm:$0xf]  ;;  %v125_v46 = vor.u32 %v124_v40, %v123_v36  ;;  %v1667_v63 = vcombine.low %v2226_v34, %v2228_v35  ;;  %v1575_v40 = vcombine.low %v257_v26, %v261_v27 }
  0x87   :  { %v2240_v45 = vld [vmem:[#allocation13 + $0x368] sm:$0xff]  ;;  %v2249_v58 = vld [vmem:[#allocation13 + $0x380] sm:$0xff]  ;;  %v264_v34 = vld [vmem:[#allocation13 + $0x50] sm:$0xff] }
  0x88   :  { %v139_v47 = vld [vmem:[%s137_s14] ss:$8 sm:$0xf0]  ;;  %126 = vst [vmem:[#allocation4] ss:$8 sm:$0xf] %v125_v46  ;;  %v1675_v16 = vcombine.low %v2238_v44, %v2240_v45 }
  0x89   :  { %1037 = vmatpush1.bf16.msra.mxu0 %v1625_v4  ;;  %1078 = vmatpush1.bf16.msra.mxu1 %v1627_v5  ;;  %v154_v48 = vld [vmem:[%s153_s0] ss:$8 sm:$0xf]  ;;  %v140_v50 = vor.u32 %v139_v47, %v138_v41  ;;  %127 = vst [vmem:[#allocation4] ss:$8 sm:$0xf0] %v125_v46  ;;  %v1676_v5 = vcombine.high %v2238_v44, %v2240_v45 }
  0x8a   :  { %1038 = vmatprep.subr.bf16.mxu0 %v1634_v6  ;;  %1079 = vmatprep.subr.bf16.mxu1 %v1636_v7  ;;  %v155_v51 = vld [vmem:[%s153_s0] ss:$8 sm:$0xf0] }
  0x8b   :  { %v170_v52 = vld [vmem:[%s169_s12] ss:$8 sm:$0xf]  ;;  %v156_v53 = vor.u32 %v155_v51, %v154_v48  ;;  %142 = vst [vmem:[#allocation4 + $0x1] ss:$8 sm:$0xf] %v140_v50 }
  0x8c   :  { %v171_v54 = vld [vmem:[%s169_s12] ss:$8 sm:$0xf0]  ;;  %143 = vst [vmem:[#allocation4 + $0x1] ss:$8 sm:$0xf0] %v140_v50 }
  0x8d   :  { %1039 = vmatpush1.bf16.msra.mxu0 %v1633_v12  ;;  %1080 = vmatpush1.bf16.msra.mxu1 %v1635_v13  ;;  %v186_v55 = vld [vmem:[%s185_s15] ss:$8 sm:$0xf]  ;;  %v172_v60 = vor.u32 %v171_v54, %v170_v52  ;;  %158 = vst [vmem:[#allocation4 + $0x2] ss:$8 sm:$0xf] %v156_v53  ;;  %v1673_v12 = vcombine.low %v2231_v38, %v2233_v39 }
  0x8e   :  { %1040 = vmatprep.subr.bf16.mxu0 %v1642_v14  ;;  %1081 = vmatprep.subr.bf16.mxu1 %v1644_v15  ;;  %v2251_v59 = vld [vmem:[#allocation13 + $0x3a0] sm:$0xff]  ;;  %v367_v1 = vld [vmem:[#allocation13 + $0x388] sm:$0xff]  ;;  %159 = vst [vmem:[#allocation4 + $0x2] ss:$8 sm:$0xf0] %v156_v53  ;;  %v268_v35 = vld [vmem:[#allocation13 + $0x70] sm:$0xff] }
  0x8f   :  { %v187_v61 = vld [vmem:[%s185_s15] ss:$8 sm:$0xf0]  ;;  %174 = vst [vmem:[#allocation4 + $0x3] ss:$8 sm:$0xf] %v172_v60  ;;  %v1682_v17 = vcombine.high %v2249_v58, %v2251_v59  ;;  %v1582_v41 = vcombine.high %v264_v34, %v268_v35  ;;  %v1581_v47 = vcombine.low %v264_v34, %v268_v35 }
  0x90   :  { %v202_v62 = vld [vmem:[%s201_s16] ss:$8 sm:$0xf]  ;;  %v188_v2 = vor.u32 %v187_v61, %v186_v55  ;;  %175 = vst [vmem:[#allocation4 + $0x3] ss:$8 sm:$0xf0] %v172_v60 }
  0x91   :  { %1041 = vmatpush1.bf16.msra.mxu0 %v1641_v20  ;;  %1082 = vmatpush1.bf16.msra.mxu1 %v1643_v21  ;;  %v203_v3 = vld [vmem:[%s201_s16] ss:$8 sm:$0xf0]  ;;  %v1681_v21 = vcombine.low %v2249_v58, %v2251_v59 }
  0x92   :  { %1042 = vmatprep.subr.bf16.mxu0 %v1650_v22  ;;  %1083 = vmatprep.subr.bf16.mxu1 %v1652_v23  ;;  %v218_v4 = vld [vmem:[%s217_s17] ss:$8 sm:$0xf]  ;;  %v204_v6 = vor.u32 %v203_v3, %v202_v62  ;;  %190 = vst [vmem:[#allocation4 + $0x4] ss:$8 sm:$0xf] %v188_v2 }
  0x93   :  { %v219_v7 = vld [vmem:[%s217_s17] ss:$8 sm:$0xf0]  ;;  %191 = vst [vmem:[#allocation4 + $0x4] ss:$8 sm:$0xf0] %v188_v2 }
  0x94   :  { %v234_v8 = vld [vmem:[%s233_s4] ss:$8 sm:$0xf]  ;;  %v220_v10 = vor.u32 %v219_v7, %v218_v4  ;;  %206 = vst [vmem:[#allocation4 + $0x5] ss:$8 sm:$0xf] %v204_v6 }
  0x95   :  { %1043 = vmatpush1.bf16.msra.mxu0 %v1649_v28  ;;  %1084 = vmatpush1.bf16.msra.mxu1 %v1651_v29  ;;  %v371_v9 = vld [vmem:[#allocation13 + $0x3a8] sm:$0xff]  ;;  %v374_v13 = vld [vmem:[#allocation13 + $0x3c0] sm:$0xff]  ;;  %207 = vst [vmem:[#allocation4 + $0x5] ss:$8 sm:$0xf0] %v204_v6  ;;  %v256_v22 = vld [vmem:[#allocation13 + $0x10] sm:$0xff] }
  0x96   :  { %1044 = vmatprep.subr.bf16.mxu0 %v1658_v30  ;;  %1085 = vmatprep.subr.bf16.mxu1 %v1660_v32  ;;  %v235_v11 = vld [vmem:[%s233_s4] ss:$8 sm:$0xf0]  ;;  %222 = vst [vmem:[#allocation4 + $0x6] ss:$8 sm:$0xf] %v220_v10  ;;  %v1684_v20 = vcombine.high %v367_v1, %v371_v9  ;;  %v1683_v24 = vcombine.low %v367_v1, %v371_v9 }
  0x97   :  { %v378_v14 = vld [vmem:[#allocation13 + $0x3e0] sm:$0xff]  ;;  %v236_v15 = vor.u32 %v235_v11, %v234_v8  ;;  %v375_v18 = vld [vmem:[#allocation13 + $0x3c8] sm:$0xff]  ;;  %223 = vst [vmem:[#allocation4 + $0x6] ss:$8 sm:$0xf0] %v220_v10  ;;  %v260_v23 = vld [vmem:[#allocation13 + $0x30] sm:$0xff] }
  0x98   :  { %v379_v19 = vld [vmem:[#allocation13 + $0x3e8] sm:$0xff]  ;;  %v1690_v25 = vcombine.high %v374_v13, %v378_v14  ;;  %v105_v29 = vld [vmem:[#allocation7] sm:$0xff]  ;;  %v1689_v30 = vcombine.low %v374_v13, %v378_v14  ;;  %v1574_v32 = vcombine.high %v256_v22, %v260_v23  ;;  %v269_v38 = vld [vmem:[#allocation13 + $0x78] sm:$0xff]  ;;  %v1573_v39 = vcombine.low %v256_v22, %v260_v23 }
  0x99   :  { %1045 = vmatpush1.bf16.msra.mxu0 %v1657_v37  ;;  %1086 = vmatpush1.bf16.msra.mxu1 %v1659_v42  ;;  %238 = vst [vmem:[#allocation4 + $0x7] ss:$8 sm:$0xf] %v236_v15  ;;  %239 = vst [vmem:[#allocation4 + $0x7] ss:$8 sm:$0xf0] %v236_v15  ;;  %v1692_v28 = vcombine.high %v375_v18, %v379_v19  ;;  %v1691_v31 = vcombine.low %v375_v18, %v379_v19 }
  0x9a   :  { %1046 = vmatprep.subr.bf16.mxu0 %v1666_v43  ;;  %1087 = vmatprep.subr.bf16.mxu1 %v1668_v49  ;;  %v2270_v36 = vpack.c.bf16 %v105_v29, %v105_v29  ;;  %v265_v37 = vld [vmem:[#allocation13 + $0x58] sm:$0xff]  ;;  %v272_v43 = vld [vmem:[#allocation13 + $0x90] sm:$0xff] }
  0x9b   :  { %v1584_v42 = vcombine.high %v265_v37, %v269_v38  ;;  %v276_v44 = vld [vmem:[#allocation13 + $0xb0] sm:$0xff]  ;;  %v273_v45 = vld [vmem:[#allocation13 + $0x98] sm:$0xff]  ;;  %v1583_v48 = vcombine.low %v265_v37, %v269_v38 }
  0x9c   :  { %v277_v46 = vld [vmem:[#allocation13 + $0xb8] sm:$0xff]  ;;  %v1590_v49 = vcombine.high %v272_v43, %v276_v44  ;;  %v280_v51 = vld [vmem:[#allocation13 + $0xd0] sm:$0xff]  ;;  %v1589_v55 = vcombine.low %v272_v43, %v276_v44 }
  0x9d   :  { %1047 = vmatpush1.bf16.msra.mxu0 %v1665_v56  ;;  %1088 = vmatpush1.bf16.msra.mxu1 %v1667_v63  ;;  %v1592_v50 = vcombine.high %v273_v45, %v277_v46  ;;  %v284_v52 = vld [vmem:[#allocation13 + $0xf0] sm:$0xff]  ;;  %v281_v53 = vld [vmem:[#allocation13 + $0xd8] sm:$0xff]  ;;  %v1591_v56 = vcombine.low %v273_v45, %v277_v46 }
  0x9e   :  { %1048 = vmatprep.subr.bf16.mxu0 %v1674_v0  ;;  %1089 = vmatprep.subr.bf16.mxu1 %v1676_v5  ;;  %v285_v54 = vld [vmem:[#allocation13 + $0xf8] sm:$0xff]  ;;  %v1598_v58 = vcombine.high %v280_v51, %v284_v52  ;;  %v288_v60 = vld [vmem:[#allocation13 + $0x110] sm:$0xff]  ;;  %v1597_v0 = vcombine.low %v280_v51, %v284_v52 }
  0x9f   :  { %v1600_v59 = vcombine.high %v281_v53, %v285_v54  ;;  %v292_v61 = vld [vmem:[#allocation13 + $0x130] sm:$0xff]  ;;  %v289_v62 = vld [vmem:[#allocation13 + $0x118] sm:$0xff]  ;;  %v1599_v1 = vcombine.low %v281_v53, %v285_v54 }
  0xa0   :  { %v293_v63 = vld [vmem:[#allocation13 + $0x138] sm:$0xff]  ;;  %v1606_v2 = vcombine.high %v288_v60, %v292_v61  ;;  %v296_v3 = vld [vmem:[#allocation13 + $0x150] sm:$0xff]  ;;  %v1605_v7 = vcombine.low %v288_v60, %v292_v61 }
  0xa1   :  { %1049 = vmatpush1.bf16.msra.mxu0 %v1673_v12  ;;  %1090 = vmatpush1.bf16.msra.mxu1 %v1675_v16  ;;  %v300_v4 = vld [vmem:[#allocation13 + $0x170] sm:$0xff]  ;;  %v297_v5 = vld [vmem:[#allocation13 + $0x158] sm:$0xff]  ;;  %v1607_v8 = vcombine.low %v289_v62, %v293_v63 }
  0xa2   :  { %1050 = vmatprep.subr.bf16.mxu0 %v1682_v17  ;;  %1091 = vmatprep.subr.bf16.mxu1 %v1684_v20  ;;  %v301_v6 = vld [vmem:[#allocation13 + $0x178] sm:$0xff]  ;;  %v1614_v9 = vcombine.high %v296_v3, %v300_v4  ;;  %v304_v11 = vld [vmem:[#allocation13 + $0x190] sm:$0xff]  ;;  %v1613_v15 = vcombine.low %v296_v3, %v300_v4 }
  0xa3   :  { %v1616_v10 = vcombine.high %v297_v5, %v301_v6  ;;  %v308_v12 = vld [vmem:[#allocation13 + $0x1b0] sm:$0xff]  ;;  %v305_v13 = vld [vmem:[#allocation13 + $0x198] sm:$0xff]  ;;  %v1615_v16 = vcombine.low %v297_v5, %v301_v6 }
  0xa4   :  { %v309_v14 = vld [vmem:[#allocation13 + $0x1b8] sm:$0xff]  ;;  %v1622_v17 = vcombine.high %v304_v11, %v308_v12  ;;  %v312_v19 = vld [vmem:[#allocation13 + $0x1d0] sm:$0xff]  ;;  %v1621_v23 = vcombine.low %v304_v11, %v308_v12 }
  0xa5   :  { %1051 = vmatpush1.bf16.msra.mxu0 %v1681_v21  ;;  %1092 = vmatpush1.bf16.msra.mxu1 %v1683_v24  ;;  %v1624_v18 = vcombine.high %v305_v13, %v309_v14  ;;  %v316_v20 = vld [vmem:[#allocation13 + $0x1f0] sm:$0xff]  ;;  %v313_v21 = vld [vmem:[#allocation13 + $0x1d8] sm:$0xff]  ;;  %v1623_v24 = vcombine.low %v305_v13, %v309_v14 }
  0xa6   :  { %1052 = vmatprep.subr.bf16.mxu0 %v1690_v25  ;;  %1093 = vmatprep.subr.bf16.mxu1 %v1692_v28  ;;  %v317_v22 = vld [vmem:[#allocation13 + $0x1f8] sm:$0xff]  ;;  %v1630_v25 = vcombine.high %v312_v19, %v316_v20  ;;  %v320_v27 = vld [vmem:[#allocation13 + $0x210] sm:$0xff] }
  0xa7   :  { %v1632_v26 = vcombine.high %v313_v21, %v317_v22  ;;  %v324_v28 = vld [vmem:[#allocation13 + $0x230] sm:$0xff]  ;;  %v321_v29 = vld [vmem:[#allocation13 + $0x218] sm:$0xff] }
  0xa8   :  { %v328_v35 = vld [vmem:[#allocation13 + $0x250] sm:$0xff]  ;;  %v329_v38 = vld [vmem:[#allocation13 + $0x258] sm:$0xff] }
  0xa9   :  { %1053 = vmatpush1.bf16.msra.mxu0 %v1689_v30  ;;  %1094 = vmatpush1.bf16.msra.mxu1 %v1691_v31  ;;  %v325_v30 = vld [vmem:[#allocation13 + $0x238] sm:$0xff]  ;;  %v1629_v31 = vcombine.low %v312_v19, %v316_v20  ;;  %v332_v37 = vld [vmem:[#allocation13 + $0x270] sm:$0xff] }
  0xaa   :  { %1104 = vmatprep.subr.bf16.mxu0 %v1574_v32  ;;  %1145 = vmatprep.subr.bf16.mxu1 %v1576_v33  ;;  %v1631_v32 = vcombine.low %v313_v21, %v317_v22  ;;  %v1638_v33 = vcombine.high %v320_v27, %v324_v28  ;;  %v1640_v34 = vcombine.high %v321_v29, %v325_v30  ;;  %v336_v44 = vld [vmem:[#allocation13 + $0x290] sm:$0xff]  ;;  %v337_v46 = vld [vmem:[#allocation13 + $0x298] sm:$0xff] }
  0xab   :  { %v340_v45 = vld [vmem:[#allocation13 + $0x2b0] sm:$0xff]  ;;  %v345_v54 = vld [vmem:[#allocation13 + $0x2d8] sm:$0xff] }
  0xac   :  { %1055 = vmatmul.mubr.bf16.vlgmr.msra.gmra.mrb[0].mxu0 %v2270_v36  ;;  %1096 = vmatmul.mubr.bf16.vlgmr.msra.gmra.mrb[0].mxu1 %v2270_v36  ;;  %v344_v52 = vld [vmem:[#allocation13 + $0x2d0] sm:$0xff]  ;;  %v361_v6 = vld [vmem:[#allocation13 + $0x358] sm:$0xff] }
  0xad   :  { %1105 = vmatpush1.bf16.msra.mxu0 %v1573_v39  ;;  %1146 = vmatpush1.bf16.msra.mxu1 %v1575_v40  ;;  %v333_v39 = vld [vmem:[#allocation13 + $0x278] sm:$0xff]  ;;  %v1637_v40 = vcombine.low %v320_v27, %v324_v28  ;;  %v348_v53 = vld [vmem:[#allocation13 + $0x2f0] sm:$0xff] }
  0xae   :  { %1106 = vmatprep.subr.bf16.mxu0 %v1582_v41  ;;  %1147 = vmatprep.subr.bf16.mxu1 %v1584_v42  ;;  %v1639_v41 = vcombine.low %v321_v29, %v325_v30  ;;  %v1646_v42 = vcombine.high %v328_v35, %v332_v37  ;;  %v1648_v43 = vcombine.high %v329_v38, %v333_v39  ;;  %v352_v61 = vld [vmem:[#allocation13 + $0x310] sm:$0xff]  ;;  %v369_v14 = vld [vmem:[#allocation13 + $0x398] sm:$0xff]  ;;  %v1764_v30 = vld [vmem:[#allocation15 + $0x40] sm:$0xff]  }
  0xaf   :  { %1136 = vmatprep.mubr.bf16.mxu0 %v2177_v57  ;;  %1177 = vmatprep.mubr.bf16.mxu1 %v2177_v57  ;;  %v1608_v57 = vcombine.high %v289_v62, %v293_v63  ;;  %v356_v62 = vld [vmem:[#allocation13 + $0x330] sm:$0xff]  ;;  %v353_v63 = vld [vmem:[#allocation13 + $0x318] sm:$0xff] }
  0xb0   :  { %v360_v4 = vld [vmem:[#allocation13 + $0x350] sm:$0xff]  ;;  %v377_v22 = vld [vmem:[#allocation13 + $0x3d8] sm:$0xff] }
  0xb1   :  { %1107 = vmatpush1.bf16.msra.mxu0 %v1581_v47  ;;  %1148 = vmatpush1.bf16.msra.mxu1 %v1583_v48  ;;  %v341_v47 = vld [vmem:[#allocation13 + $0x2b8] sm:$0xff]  ;;  %v1645_v48 = vcombine.low %v328_v35, %v332_v37  ;;  %v364_v5 = vld [vmem:[#allocation13 + $0x370] sm:$0xff] }
  0xb2   :  { %1108 = vmatprep.subr.bf16.mxu0 %v1590_v49  ;;  %1149 = vmatprep.subr.bf16.mxu1 %v1592_v50  ;;  %v1647_v49 = vcombine.low %v329_v38, %v333_v39  ;;  %v1654_v50 = vcombine.high %v336_v44, %v340_v45  ;;  %v1656_v51 = vcombine.high %v337_v46, %v341_v47  ;;  %v368_v12 = vld [vmem:[#allocation13 + $0x390] sm:$0xff]  ;;  %v1770_v37 = vld [vmem:[#allocation15 + $0x58] sm:$0xff]   ;;  %v1772_v39 = vld [vmem:[#allocation15 + $0x60] sm:$0xff]  }
  0xb3   :  { %v372_v13 = vld [vmem:[#allocation13 + $0x3b0] sm:$0xff]  ;;  %v1771_v38 = vld [vmem:[#allocation15 + $0x18] sm:$0xff]  }
  0xb4   :  { %v376_v20 = vld [vmem:[#allocation13 + $0x3d0] sm:$0xff] }
  0xb5   :  { %1109 = vmatpush1.bf16.msra.mxu0 %v1589_v55  ;;  %1150 = vmatpush1.bf16.msra.mxu1 %v1591_v56  ;;  %v349_v55 = vld [vmem:[#allocation13 + $0x2f8] sm:$0xff]  ;;  %v1653_v56 = vcombine.low %v336_v44, %v340_v45  ;;  %v380_v21 = vld [vmem:[#allocation13 + $0x3f0] sm:$0xff] }
  0xb6   :  { %1110 = vmatprep.subr.bf16.mxu0 %v1598_v58  ;;  %1151 = vmatprep.subr.bf16.mxu1 %v1600_v59  ;;  %v1655_v58 = vcombine.low %v337_v46, %v341_v47  ;;  %v1662_v59 = vcombine.high %v344_v52, %v348_v53  ;;  %v1664_v60 = vcombine.high %v345_v54, %v349_v55  ;;  %v1769_v35 = vld [vmem:[#allocation15 + $0x10] sm:$0xff]   ;;  %v1778_v44 = vld [vmem:[#allocation15 + $0x78] sm:$0xff]  }
  0xb7   :  { %v1693_v28 = vcombine.low %v376_v20, %v380_v21  ;;  %v1779_v45 = vld [vmem:[#allocation15 + $0x38] sm:$0xff]  }
  0xb9   :  { %1111 = vmatpush1.bf16.msra.mxu0 %v1597_v0  ;;  %1152 = vmatpush1.bf16.msra.mxu1 %v1599_v1  ;;  %v357_v0 = vld [vmem:[#allocation13 + $0x338] sm:$0xff]  ;;  %v1661_v1 = vcombine.low %v344_v52, %v348_v53 }
  0xba   :  { %1112 = vmatprep.subr.bf16.mxu0 %v1606_v2  ;;  %1153 = vmatprep.subr.bf16.mxu1 %v1608_v57  ;;  %v1663_v2 = vcombine.low %v345_v54, %v349_v55  ;;  %v1670_v57 = vcombine.high %v352_v61, %v356_v62  ;;  %v1672_v3 = vcombine.high %v353_v63, %v357_v0  ;;  %v1196_v54 = vlaneseq }
  0xbc   :  { %v1197_v55 = vshrl.u32 %v1196_v54, 7 }
  0xbd   :  { %1113 = vmatpush1.bf16.msra.mxu0 %v1605_v7  ;;  %1154 = vmatpush1.bf16.msra.mxu1 %v1607_v8  ;;  %v365_v7 = vld [vmem:[#allocation13 + $0x378] sm:$0xff]  ;;  %v1669_v8 = vcombine.low %v352_v61, %v356_v62  ;;  %v246_v61 = vld [vmem:[#allocation4 + $0x10] sm:$0xff] }
  0xbe   :  { %1114 = vmatprep.subr.bf16.mxu0 %v1614_v9  ;;  %1155 = vmatprep.subr.bf16.mxu1 %v1616_v10  ;;  %v1671_v9 = vcombine.low %v353_v63, %v357_v0  ;;  %v1678_v10 = vcombine.high %v360_v4, %v364_v5  ;;  %v1680_v11 = vcombine.high %v361_v6, %v365_v7  ;;  %v1202_v62 = vsub.s32 1, %v1197_v55  ;;  %v245_v63 = vld [vmem:[#allocation4 + $0x8] sm:$0xff] }
  0xbf   :  { %v1210_v0 = vsub.s32 3, %v1197_v55 }
  0xc1   :  { %1115 = vmatpush1.bf16.msra.mxu0 %v1613_v15  ;;  %1156 = vmatpush1.bf16.msra.mxu1 %v1615_v16  ;;  %v373_v15 = vld [vmem:[#allocation13 + $0x3b8] sm:$0xff]  ;;  %v1677_v16 = vcombine.low %v360_v4, %v364_v5 }
  0xc2   :  { %1116 = vmatprep.subr.bf16.mxu0 %v1622_v17  ;;  %1157 = vmatprep.subr.bf16.mxu1 %v1624_v18  ;;  %v1679_v17 = vcombine.low %v361_v6, %v365_v7  ;;  %v1686_v18 = vcombine.high %v368_v12, %v372_v13  ;;  %v1688_v19 = vcombine.high %v369_v14, %v373_v15 }
  0xc5   :  { %1117 = vmatpush1.bf16.msra.mxu0 %v1621_v23  ;;  %1158 = vmatpush1.bf16.msra.mxu1 %v1623_v24  ;;  %v381_v23 = vld [vmem:[#allocation13 + $0x3f8] sm:$0xff]  ;;  %v1685_v24 = vcombine.low %v368_v12, %v372_v13 }
  0xc6   :  { %1118 = vmatprep.subr.bf16.mxu0 %v1630_v25  ;;  %1159 = vmatprep.subr.bf16.mxu1 %v1632_v26  ;;  %v1687_v25 = vcombine.low %v369_v14, %v373_v15  ;;  %v1694_v26 = vcombine.high %v376_v20, %v380_v21  ;;  %v1696_v27 = vcombine.high %v377_v22, %v381_v23  ;;  %v1222_v21 = vsub.s32 6, %v1197_v55 }
  0xc7   :  { %v1695_v29 = vcombine.low %v377_v22, %v381_v23  ;;  %v1218_v22 = vsub.s32 5, %v1197_v55 }
  0xc9   :  { %1119 = vmatpush1.bf16.msra.mxu0 %v1629_v31  ;;  %1160 = vmatpush1.bf16.msra.mxu1 %v1631_v32  ;;  %v1765_v31 = vld [vmem:[#allocation15] sm:$0xff]   ;;  %v1766_v32 = vld [vmem:[#allocation15 + $0x48] sm:$0xff]  }
  0xca   :  { %1120 = vmatprep.subr.bf16.mxu0 %v1638_v33  ;;  %1161 = vmatprep.subr.bf16.mxu1 %v1640_v34  ;;  %v1767_v33 = vld [vmem:[#allocation15 + $0x8] sm:$0xff]   ;;  %v1768_v34 = vld [vmem:[#allocation15 + $0x50] sm:$0xff]  }
  0xcd   :  { %1121 = vmatpush1.bf16.msra.mxu0 %v1637_v40  ;;  %1162 = vmatpush1.bf16.msra.mxu1 %v1639_v41  ;;  %v1773_v40 = vld [vmem:[#allocation15 + $0x20] sm:$0xff]   ;;  %v1774_v41 = vld [vmem:[#allocation15 + $0x68] sm:$0xff]  }
  0xce   :  { %1122 = vmatprep.subr.bf16.mxu0 %v1646_v42  ;;  %1163 = vmatprep.subr.bf16.mxu1 %v1648_v43  ;;  %v1776_v42 = vld [vmem:[#allocation15 + $0x70] sm:$0xff]  }
  0xcf   :  { %v1777_v43 = vld [vmem:[#allocation15 + $0x30] sm:$0xff]  }
  0xd1   :  { %1123 = vmatpush1.bf16.msra.mxu0 %v1645_v48  ;;  %1164 = vmatpush1.bf16.msra.mxu1 %v1647_v49 }
  0xd2   :  { %1124 = vmatprep.subr.bf16.mxu0 %v1654_v50  ;;  %1165 = vmatprep.subr.bf16.mxu1 %v1656_v51 }
  0xd5   :  { %1125 = vmatpush1.bf16.msra.mxu0 %v1653_v56  ;;  %1166 = vmatpush1.bf16.msra.mxu1 %v1655_v58  ;;  %v1198_v56 = vsub.s32 0, %v1197_v55  ;;  %v244_v58 = vld [vmem:[#allocation4] sm:$0xff] }
  0xd6   :  { %1126 = vmatprep.subr.bf16.mxu0 %v1662_v59  ;;  %1167 = vmatprep.subr.bf16.mxu1 %v1664_v60  ;;  %v1194_v59 = vld [vmem:[%s2325_s5] sm:$0xff]  ;;  %v1206_v60 = vsub.s32 2, %v1197_v55  ;;  %s2021_s5 = smov [#allocation17]  }
  0xd7   :  { %v1203_v6 = vrot.slane %v1194_v59, %v1202_v62  ;;  %s1494_s30 = sshll.u32 %s2021_s5, 4  ;;  %s1495_s30 = int_to_ptr.vmem [resolvable:$true] %s1494_s30 }
  0xd8   :  { %v1207_v4 = vrot.slane %v1194_v59, %v1206_v60  ;;  %s1932_s18 = scalar_lea.vmem %s1495_s30, 256  ;;  %p1937_p2 = scmp.lt.s32.totalorder %s1495_s30, %s1495_s30 }
  0xd9   :  { %1127 = vmatpush1.bf16.msra.mxu0 %v1661_v1  ;;  %1168 = vmatpush1.bf16.msra.mxu1 %v1663_v2  ;;  %v1199_v2 = vrot.slane %v1194_v59, %v1198_v56  ;;  %p1933_p1 = scmp.ne.s32.totalorder %s1495_s30, %s1932_s18  ;;  %p1938_p3 = scmp.lt.s32.totalorder %s1932_s18, %s1932_s18 }
  0xda   :  { %1128 = vmatprep.subr.bf16.mxu0 %v1670_v57  ;;  %1169 = vmatprep.subr.bf16.mxu1 %v1672_v3  ;;  %v247_v57 = vld [vmem:[#allocation4 + $0x18] sm:$0xff] }
  0xdb   :  { %p1939_p4 = por %p1938_p3, %p1937_p2 }
  0xdd   :  { %1129 = vmatpush1.bf16.msra.mxu0 %v1669_v8  ;;  %1170 = vmatpush1.bf16.msra.mxu1 %v1671_v9  ;;  %v1211_v8 = vrot.slane %v1194_v59, %v1210_v0  ;;  %p1940_p5 = pnand %p1939_p4, %p1933_p1 }
  0xde   :  { %1130 = vmatprep.subr.bf16.mxu0 %v1678_v10  ;;  %1171 = vmatprep.subr.bf16.mxu1 %v1680_v11 }
  0xe1   :  { %1131 = vmatpush1.bf16.msra.mxu0 %v1677_v16  ;;  %1172 = vmatpush1.bf16.msra.mxu1 %v1679_v17 }
  0xe2   :  { %1132 = vmatprep.subr.bf16.mxu0 %v1686_v18  ;;  %1173 = vmatprep.subr.bf16.mxu1 %v1688_v19  ;;  %v1214_v19 = vsub.s32 4, %v1197_v55 }
  0xe5   :  { %1133 = vmatpush1.bf16.msra.mxu0 %v1685_v24  ;;  %1174 = vmatpush1.bf16.msra.mxu1 %v1687_v25  ;;  %v1226_v25 = vsub.s32 7, %v1197_v55 }
  0xe6   :  { %1134 = vmatprep.subr.bf16.mxu0 %v1694_v26  ;;  %1175 = vmatprep.subr.bf16.mxu1 %v1696_v27  ;;  %v248_v27 = vld [vmem:[#allocation4 + $0x20] sm:$0xff] }
  0xe9   :  { %1135 = vmatpush1.bf16.msra.mxu0 %v1693_v28  ;;  %1176 = vmatpush1.bf16.msra.mxu1 %v1695_v29  ;;  %v1215_v29 = vrot.slane %v1194_v59, %v1214_v19 }
  0xea   :  { %1728 = vmatprep.subr.bf16.mxu0 %v1764_v30  ;;  %v250_v30 = vld [vmem:[#allocation4 + $0x30] sm:$0xff] }
  0xec   :  { %1137 = vmatmul.mubr.bf16.vlgmr.msra.gmra.mrb[4].mxu0 %v2270_v36  ;;  %1178 = vmatmul.mubr.bf16.vlgmr.msra.gmra.mrb[4].mxu1 %v2270_v36  ;;  %v1775_v36 = vld [vmem:[#allocation15 + $0x28] sm:$0xff]  }
  0xed   :  { %1729 = vmatpush3.bf16.msra.mxu0 %v1765_v31  ;;  %v249_v31 = vld [vmem:[#allocation4 + $0x28] sm:$0xff] }
  0xee   :  { %1730 = vmatprep.subr.bf16.mxu0 %v1766_v32 }
  0xf1   :  { %1731 = vmatpush3.bf16.msra.mxu0 %v1767_v33 }
  0xf2   :  { %1732 = vmatprep.subr.bf16.mxu0 %v1768_v34  ;;  %v1223_v34 = vrot.slane %v1194_v59, %v1222_v21 }
  0xf5   :  { %1733 = vmatpush3.bf16.msra.mxu0 %v1769_v35  ;;  %v1219_v35 = vrot.slane %v1194_v59, %v1218_v22 }
  0xf6   :  { %1734 = vmatprep.subr.bf16.mxu0 %v1770_v37  ;;  %v251_v37 = vld [vmem:[#allocation4 + $0x38] sm:$0xff] }
  0xf9   :  { %1735 = vmatpush3.bf16.msra.mxu0 %v1771_v38 }
  0xfa   :  { %1736 = vmatprep.subr.bf16.mxu0 %v1772_v39 }
  0xfd   :  { %1737 = vmatpush3.bf16.msra.mxu0 %v1773_v40 }
  0xfe   :  { %1738 = vmatprep.subr.bf16.mxu0 %v1774_v41  ;;  %v1227_v41 = vrot.slane %v1194_v59, %v1226_v25  ;;  %v109_v59 = vld [vmem:[#allocation10] sm:$0xff] }
 0x101   :  { %1739 = vmatpush3.bf16.msra.mxu0 %v1775_v36 }
 0x102   :  { %1740 = vmatprep.subr.bf16.mxu0 %v1776_v42 }
 0x105   :  { %1741 = vmatpush3.bf16.msra.mxu0 %v1777_v43 }
 0x106   :  { %1742 = vmatprep.subr.bf16.mxu0 %v1778_v44 }
 0x109   :  { %1743 = vmatpush3.bf16.msra.mxu0 %v1779_v45 }
 0x17f   :  { %v1056_v46 = vpop.f32.mrb[0].mxu0  ;;  %v1097_v47 = vpop.f32.mrb[0].mxu1 }
 0x180   :  { %v1058_v48 = vpop.f32.mrb[1].mxu0  ;;  %v1099_v49 = vpop.f32.mrb[1].mxu1  ;;  %v1186_v1 = vadd.f32 %v1056_v46, %v244_v58  ;;  %v1188_v3 = vadd.f32 %v1097_v47, %v246_v61  ;;  %v110_v61 = vld [vmem:[#allocation10 + $0x8] sm:$0xff] }
 0x181   :  { %v1060_v50 = vpop.f32.mrb[2].mxu0  ;;  %v1101_v51 = vpop.f32.mrb[2].mxu1  ;;  %v1187_v5 = vadd.f32 %v1058_v48, %v245_v63  ;;  %v1189_v7 = vadd.f32 %v1099_v49, %v247_v57 }
 0x182   :  { %v1061_v52 = vpop.f32.mrb[3].mxu0  ;;  %v1102_v53 = vpop.f32.mrb[3].mxu1  ;;  %v1236_v9 = vadd.f32 %v1199_v2, %v1186_v1  ;;  %v1238_v10 = vadd.f32 %v1207_v4, %v1188_v3 }
 0x183   :  { %v1237_v11 = vadd.f32 %v1203_v6, %v1187_v5  ;;  %v1239_v12 = vadd.f32 %v1211_v8, %v1189_v7 }
 0x184   :  { %v1697_v13 = vmul.f32 -1.442695, %v1236_v9  ;;  %v1699_v14 = vmul.f32 -1.442695, %v1238_v10 }
 0x185   :  { %v1698_v15 = vmul.f32 -1.442695, %v1237_v11  ;;  %v1700_v16 = vmul.f32 -1.442695, %v1239_v12 }
 0x186   :  { %1780 = vpow2.f32 %v1697_v13 }
 0x187   :  { %1782 = vpow2.f32 %v1699_v14 }
 0x188   :  { %1784 = vpow2.f32 %v1698_v15 }
 0x189   :  { %1786 = vpow2.f32 %v1700_v16 }
 0x190   :  { %v1781_v17 = vpop.eup %1780 }
 0x191   :  { %v1783_v18 = vpop.eup %1782  ;;  %v1250_v24 = vadd.f32 1.0, %v1781_v17 }
 0x192   :  { %v1785_v20 = vpop.eup %1784  ;;  %v1262_v26 = vadd.f32 1.0, %v1783_v18 }
 0x193   :  { %v1787_v23 = vpop.eup %1786  ;;  %v1251_v28 = vadd.f32 1.0, %v1785_v20  ;;  %1788 = vrcp.f32 %v1250_v24 }
 0x194   :  { %v1263_v32 = vadd.f32 1.0, %v1787_v23  ;;  %1790 = vrcp.f32 %v1262_v26 }
 0x195   :  { %1792 = vrcp.f32 %v1251_v28 }
 0x196   :  { %1794 = vrcp.f32 %v1263_v32 }
 0x19d   :  { %v1789_v55 = vpop.eup %1788 }
 0x19e   :  { %v1791_v56 = vpop.eup %1790 }
 0x19f   :  { %v1793_v58 = vpop.eup %1792  ;;  %v1282_v0 = vmul.f32 %v1791_v56, %v109_v59 }
 0x1a0   :  { %v1795_v60 = vpop.eup %1794 }
 0x1a1   :  { %v1283_v2 = vmul.f32 %v1795_v60, %v110_v61 }
 0x1bf   :  { %v1138_v33 = vpop.f32.mrb[4].mxu0  ;;  %v1179_v39 = vpop.f32.mrb[4].mxu1 }
 0x1c0   :  { %v1190_v38 = vadd.f32 %v1138_v33, %v248_v27  ;;  %v1140_v40 = vpop.f32.mrb[5].mxu0  ;;  %v1192_v36 = vadd.f32 %v1179_v39, %v250_v30  ;;  %v1181_v43 = vpop.f32.mrb[5].mxu1 }
 0x1c1   :  { %v1191_v42 = vadd.f32 %v1140_v40, %v249_v31  ;;  %v1142_v44 = vpop.f32.mrb[6].mxu0  ;;  %v1193_v46 = vadd.f32 %v1181_v43, %v251_v37  ;;  %v1183_v47 = vpop.f32.mrb[6].mxu1 }
 0x1c2   :  { %v1240_v45 = vadd.f32 %v1215_v29, %v1190_v38  ;;  %v1143_v48 = vpop.f32.mrb[7].mxu0  ;;  %v1242_v49 = vadd.f32 %v1223_v34, %v1192_v36  ;;  %v1184_v51 = vpop.f32.mrb[7].mxu1 }
 0x1c3   :  { %v1241_v50 = vadd.f32 %v1219_v35, %v1191_v42  ;;  %v1243_v52 = vadd.f32 %v1227_v41, %v1193_v46 }
 0x1c4   :  { %1796 = vtanh.f32 %v1240_v45  ;;  %v1701_v53 = vmul.f32 -1.442695, %v1242_v49 }
 0x1c5   :  { %1798 = vtanh.f32 %v1241_v50  ;;  %v1702_v54 = vmul.f32 -1.442695, %v1243_v52 }
 0x1c6   :  { %1800 = vpow2.f32 %v1701_v53 }
 0x1c7   :  { %1802 = vpow2.f32 %v1702_v54 }
 0x1ce   :  { %v1797_v62 = vpop.eup %1796 }
 0x1cf   :  { %v1799_v63 = vpop.eup %1798  ;;  %v1284_v1 = vmul.f32 %v1797_v62, %v1789_v55 }
 0x1d0   :  { %v1285_v57 = vmul.f32 %v1799_v63, %v1793_v58  ;;  %v1801_v3 = vpop.eup %1800 }
 0x1d1   :  { %v1286_v4 = vadd.f32 %v1284_v1, %v1282_v0  ;;  %v1803_v5 = vpop.eup %1802  ;;  %v1276_v6 = vadd.f32 1.0, %v1801_v3 }
 0x1d2   :  { %v1287_v7 = vadd.f32 %v1285_v57, %v1283_v2  ;;  %v1277_v8 = vadd.f32 1.0, %v1803_v5 }
 0x1d3   :  { %1804 = vtanh.f32 %v1286_v4  ;;  %1476 = vst [vmem:[#allocation19] sm:$0xff] %v1286_v4 }
 0x1d4   :  { %1806 = vrcp.f32 %v1276_v6  ;;  %1477 = vst [vmem:[#allocation19 + $0x8] sm:$0xff] %v1287_v7 }
 0x1d5   :  { %1808 = vrcp.f32 %v1277_v8 }
 0x1d6   :  { %1810 = vtanh.f32 %v1287_v7 }
 0x1dd   :  { %v1805_v9 = vpop.eup %1804 }
 0x1de   :  { %v1807_v10 = vpop.eup %1806 }
 0x1df   :  { %v1809_v11 = vpop.eup %1808  ;;  %v1290_v12 = vmul.f32 %v1807_v10, %v1805_v9 }
 0x1e0   :  { %v1811_v13 = vpop.eup %1810 }
 0x1e1   :  { %v1291_v14 = vmul.f32 %v1811_v13, %v1809_v11  ;;  %1474 = vst [vmem:[#allocation17] sm:$0xff] %v1290_v12  ;;  %v1296_v16 = vpack.c.bf16 %v1290_v12, %v1290_v12 }
 0x1e3   :  { %v1297_v15 = vpack.c.bf16 %v1291_v14, %v1291_v14  ;;  %1475 = vst [vmem:[#allocation17 + $0x8] sm:$0xff] %v1291_v14 }
 0x1e5   :  { %1465 = vmatprep.mubr.bf16.mxu0 %v1297_v15 }
 0x1e6   :  { %1466 = vmatmul.mubr.bf16.vlgmr.msra.gmra.mrb[8].mxu0 %v1296_v16 }
 0x1e7   :  { %1943 = shalt.err (!%p1940_p5)
}
 0x1e8   :  { %s1944_s20 = scalar_lea.hbm %s2329_s9, 256 }
 0x1e9   :  { %p1945_p6 = scmp.ne.s32.totalorder %s2329_s9, %s1944_s20  ;;  %p1948_p7 = scmp.lt.u32.totalorder %s1944_s20, %s2329_s9 }
 0x1eb   :  { %p1950_p8 = pnand %p1948_p7, %p1945_p6 }
 0x1ed   :  { %1953 = shalt.err (!%p1950_p8)
}
 0x1ee   :  { %1497 = dma.vmem_to_hbm [thread:$0]  %s1495_s30, 256, %s2329_s9, [#allocation18]  }
 0x1ef   :  { %s2022_s27 = smov [#allocation19]  }
 0x1f0   :  { %s1504_s28 = sshll.u32 %s2022_s27, 4  ;;  %s1505_s28 = int_to_ptr.vmem [resolvable:$true] %s1504_s28 }
 0x1f1   :  { %s1954_s29 = scalar_lea.vmem %s1505_s28, 256  ;;  %p1959_p10 = scmp.lt.s32.totalorder %s1505_s28, %s1505_s28 }
 0x1f2   :  { %p1955_p9 = scmp.ne.s32.totalorder %s1505_s28, %s1954_s29  ;;  %p1960_p11 = scmp.lt.s32.totalorder %s1954_s29, %s1954_s29 }
 0x1f4   :  { %p1961_p12 = por %p1960_p11, %p1959_p10 }
 0x1f6   :  { %p1962_p13 = pnand %p1961_p12, %p1955_p9 }
 0x1f8   :  { %1965 = shalt.err (!%p1962_p13)
}
 0x1f9   :  { %s1966_s23 = scalar_lea.hbm %s2330_s10, 256 }
 0x1fa   :  { %p1967_p0 = scmp.ne.s32.totalorder %s2330_s10, %s1966_s23  ;;  %p1970_p1 = scmp.lt.u32.totalorder %s1966_s23, %s2330_s10 }
 0x1fc   :  { %p1972_p2 = pnand %p1970_p1, %p1967_p0 }
 0x1fe   :  { %1975 = shalt.err (!%p1972_p2)
}
 0x1ff   :  { %1507 = dma.vmem_to_hbm [thread:$0]  %s1505_s28, 256, %s2330_s10, [#allocation18]   ;;  %v1703_v18 = vld [vmem:[%s2327_s7] ss:$0 sm:$0xff] }
 0x200   :  { %s2023_s26 = smov [#allocation16]  }
 0x201   :  { %s1484_s3 = sshll.u32 %s2023_s26, 4  ;;  %s1485_s3 = int_to_ptr.vmem [resolvable:$true] %s1484_s3 }
 0x202   :  { %s1976_s5 = scalar_lea.vmem %s1485_s3, 128  ;;  %p1981_p4 = scmp.lt.s32.totalorder %s1485_s3, %s1485_s3 }
 0x203   :  { %p1977_p3 = scmp.ne.s32.totalorder %s1485_s3, %s1976_s5  ;;  %p1982_p5 = scmp.lt.s32.totalorder %s1976_s5, %s1976_s5 }
 0x205   :  { %p1983_p6 = por %p1982_p5, %p1981_p4 }
 0x207   :  { %p1984_p7 = pnand %p1983_p6, %p1977_p3 }
 0x2b9   :  { %v1744_v17 = vpop.f32.mrb[8].mxu0 }
 0x2ba   :  { %v1745_v19 = vpop.f32.mrb[9].mxu0 }
 0x2bb   :  { %v1746_v20 = vadd.f32 %v1745_v19, %v1744_v17  ;;  %v1747_v21 = vpop.f32.mrb[10].mxu0 }
 0x2bc   :  { %v1748_v22 = vpop.f32.mrb[11].mxu0 }
 0x2bd   :  { %v1468_v23 = vadd.f32 %v1746_v20, %v1703_v18 }
 0x2bf   :  { %1473 = vst [vmem:[#allocation16] sm:$0xff] %v1468_v23 }
 0x2c0   :  { %1987 = shalt.err (!%p1984_p7)
}
 0x2c1   :  { %s1988_s7 = scalar_lea.hbm %s2328_s8, 128 }
 0x2c2   :  { %p1989_p8 = scmp.ne.s32.totalorder %s2328_s8, %s1988_s7  ;;  %p1992_p9 = scmp.lt.u32.totalorder %s1988_s7, %s2328_s8 }
 0x2c4   :  { %p1994_p10 = pnand %p1992_p9, %p1989_p8 }
 0x2c6   :  { %1997 = shalt.err (!%p1994_p10)
}
 0x2c7   :  { %1487 = dma.vmem_to_hbm [thread:$0]  %s1485_s3, 128, %s2328_s8, [#allocation9]  }
 0x2c8   :  { %2006 = dma.done.wait [#allocation9], 128  }
 0x2c9   :  { %2007 = vsyncadd [#allocation9], 4294967168 }
 0x2ca   :  { %2008 = dma.done.wait [#allocation18], 512  }
 0x2cb   :  { %2009 = vsyncadd [#allocation18], 4294966784 }
 0x2cc   :  { %1517 = vsyncpa [#allocation8], 1 }
 0x2cd   :  { %1518 = vsyncpa [#allocation11], 1 }
 0x2ce   :  { %1519 = vsyncpa [#allocation14], 1 }
 0x2cf   :  { %1520 = vsyncpa [#allocation9], 1 }
 0x2d0   :  { %1521 = vsyncpa [#allocation18], 1 }

</bundles_post_ra>
